<compile_context>
chip_gen: v7x
topology: tpu7x:2x2x1
jax: 0.10.0
libtpu: 0.0.40
codegen_flags: <defaults>
</compile_context>

<pallas_src>
import jax
import jax.numpy as jnp
from jax.experimental import pallas as pl
from jax.experimental.pallas import tpu as pltpu


def _round_up(a, b):
    return ((a + b - 1) // b) * b


_SOFTPLUS_THRESHOLD = 20.0


def _softplus(x):
    # torch.nn.Softplus(beta=1, threshold=20): log1p(exp(x)) below threshold,
    # identity above. exp() may overflow to inf above the threshold, but that
    # branch is never selected, so no NaNs.
    return jnp.where(x > _SOFTPLUS_THRESHOLD, x, jnp.log1p(jnp.exp(x)))


# ---------------------------------------------------------------------------
# Pallas kernel: fused Bayesian sampling + 4-layer MLP
# (hidden layers with Softplus + linear head)
# ---------------------------------------------------------------------------
def bbb_mlp_kernel(x_ref, *refs):
    """refs layout:
         6 * n_layers param refs   (W_mu, W_rho, W_eps, b_mu, b_rho, b_eps) / layer
         1 output ref
         2 * n_layers VMEM scratch refs (sampled W, sampled b) / layer
       W_* are [in, out] (pre-transposed), b_* are [1, out]."""
    n_layers = (len(refs) - 1) // 8
    params = refs[:6 * n_layers]
    out_ref = refs[6 * n_layers]
    scratch = refs[6 * n_layers + 1:]

    # Sample the weights once (first grid step); scratch persists across steps.
    @pl.when(pl.program_id(0) == 0)
    def _sample_weights():
        for l in range(n_layers):
            wm, wr, we, bm, br, be = params[6 * l:6 * l + 6]
            w_s, b_s = scratch[2 * l], scratch[2 * l + 1]
            # Reparameterized sample: mu + eps * softplus(rho).  rho ~ -3 so
            # the plain log1p(exp(.)) form is safe (matches torch BBBLinear).
            w_s[...] = wm[...] + we[...] * jnp.log1p(jnp.exp(wr[...]))
            b_s[...] = bm[...] + be[...] * jnp.log1p(jnp.exp(br[...]))

    h = x_ref[...]
    for l in range(n_layers):
        w_s, b_s = scratch[2 * l], scratch[2 * l + 1]
        h = jnp.dot(h, w_s[...], preferred_element_type=jnp.float32) + b_s[...]
        if l < n_layers - 1:                 # hidden layers get the activation
            h = _softplus(h)
    out_ref[...] = h                         # full (TB, 128k) tile -> unmasked vst


# ---------------------------------------------------------------------------
# Wrapper: padding, batch tiling, pallas_call
# ---------------------------------------------------------------------------
def bbb_multiple_linear_forward(x, params, *, block_batch=512):
    """x: [B, in_features] f32.
    params: list over layers of 6-tuples (W_mu, W_rho, W_eps, b_mu, b_rho, b_eps),
            W_* shaped [in, out] (pre-transposed), b_* shaped [1, out]."""
    B, in_f = x.shape
    out_dim = params[-1][0].shape[1]

    # --- lane/sublane-dense padding --------------------------------------
    out_pad = _round_up(out_dim, 128)        # lane-dense head -> unmasked stores
    b_pad = _round_up(B, 8)                  # full f32 sublane
    tb = min(_round_up(block_batch, 8), b_pad)   # batch tile (multiple of 8)
    b_pad = _round_up(b_pad, tb)

    x_p = x if b_pad == B else jnp.pad(x, ((0, b_pad - B), (0, 0)))

    layers = list(params[:-1])
    wm, wr, we, bm, br, be = params[-1]
    pc = out_pad - out_dim
    if pc:
        # Zero-padding (mu = rho = eps = 0) yields sampled weight/bias columns
        # of exactly 0 (0 + 0*log1p(exp(0))), so the padded output columns are 0.
        wm, wr, we = (jnp.pad(a, ((0, 0), (0, pc))) for a in (wm, wr, we))
        bm, br, be = (jnp.pad(a, ((0, 0), (0, pc))) for a in (bm, br, be))
    layers.append((wm, wr, we, bm, br, be))

    # --- specs ------------------------------------------------------------
    flat_args = [x_p]
    in_specs = [pl.BlockSpec((tb, in_f), lambda i: (i, 0))]
    scratch_shapes = []
    for (lwm, lwr, lwe, lbm, lbr, lbe) in layers:
        for a in (lwm, lwr, lwe, lbm, lbr, lbe):
            flat_args.append(a)
            # Parameters: same block every grid step -> DMA'd once, VMEM-resident.
            in_specs.append(pl.BlockSpec(a.shape, lambda i: (0, 0)))
        # Persistent scratch for the sampled weight / bias of this layer.
        scratch_shapes.append(pltpu.VMEM(lwm.shape, jnp.float32))
        scratch_shapes.append(pltpu.VMEM(lbm.shape, jnp.float32))

    out = pl.pallas_call(
        bbb_mlp_kernel,
        out_shape=jax.ShapeDtypeStruct((b_pad, out_pad), jnp.float32),
        grid=(pl.cdiv(b_pad, tb),),
        in_specs=in_specs,
        out_specs=pl.BlockSpec((tb, out_pad), lambda i: (i, 0)),
        scratch_shapes=scratch_shapes,
        compiler_params=pltpu.CompilerParams(
            # Step 0 fills the sampled-weight scratch -> sequential ("arbitrary").
            dimension_semantics=("arbitrary",),
            vmem_limit_bytes=32 * 1024 * 1024,
        ),
    )(*flat_args)
    return out[:B, :out_dim]


# ---------------------------------------------------------------------------
# Deterministic Bayesian parameter construction (glue, plain JAX).
# Only (mu, rho, eps) are materialized; the sample itself happens in-kernel.
# ---------------------------------------------------------------------------
def init_bbb_linear(key, in_f, out_f, priors):
    mu0, mu_s = priors['posterior_mu_initial']
    rho0, rho_s = priors['posterior_rho_initial']
    k = jax.random.split(key, 6)
    W_mu = mu0 + mu_s * jax.random.normal(k[0], (out_f, in_f), jnp.float32)
    W_rho = rho0 + rho_s * jax.random.normal(k[1], (out_f, in_f), jnp.float32)
    b_mu = mu0 + mu_s * jax.random.normal(k[2], (out_f,), jnp.float32)
    b_rho = rho0 + rho_s * jax.random.normal(k[3], (out_f,), jnp.float32)
    W_eps = jax.random.normal(k[4], (out_f, in_f), jnp.float32)
    b_eps = jax.random.normal(k[5], (out_f,), jnp.float32)
    # Pre-transpose to [in, out] for the kernel's x @ W convention; bias [1, out].
    return (W_mu.T, W_rho.T, W_eps.T,
            b_mu.reshape(1, out_f), b_rho.reshape(1, out_f), b_eps.reshape(1, out_f))


def build_params(key, inputs, outputs, n_blocks=3):
    priors = {
        'prior_mu': 0.0,
        'prior_sigma': 0.1,
        'posterior_mu_initial': (0.0, 0.1),
        'posterior_rho_initial': (-3.0, 0.1),
    }
    # linears list from the module: inputs->32, 32->32, 32->128, 128->128
    dims = [(inputs, 32), (32, 32), (32, 128), (128, 128)]
    keys = jax.random.split(key, n_blocks + 1)
    params = []
    out_channel = inputs
    for l in range(n_blocks):
        in_f, out_f = dims[l]
        params.append(init_bbb_linear(keys[l], in_f, out_f, priors))
        out_channel = out_f
    # fc_out: out_channel -> outputs
    params.append(init_bbb_linear(keys[n_blocks], out_channel, outputs, priors))
    return params


# Pure-JAX reference of the same forward (full-precision matmuls).
def reference_forward(x, params):
    h = x
    n = len(params)
    for l, (wm, wr, we, bm, br, be) in enumerate(params):
        w = wm + we * jnp.log1p(jnp.exp(wr))
        b = bm + be * jnp.log1p(jnp.exp(br))
        h = jnp.dot(h, w, precision=jax.lax.Precision.HIGHEST) + b
        if l < n - 1:
            h = _softplus(h)
    return h


if __name__ == "__main__":
    # Small shapes consistent with the module: batch=4, inputs=16, outputs=10,
    # n_blocks=3 (i.e. inputs->32->32->128 hidden, then 128->10 head).
    batch, inputs, outputs, n_blocks = 4, 16, 10, 3

    key = jax.random.PRNGKey(0)
    kx, kp = jax.random.split(key)
    x = jax.random.normal(kx, (batch, inputs), jnp.float32)
    params = build_params(kp, inputs, outputs, n_blocks=n_blocks)

    out = bbb_multiple_linear_forward(x, params)
    out = jax.block_until_ready(out)

    ref = reference_forward(x, params)
    assert out.shape == (batch, outputs)
    # Tolerance covers the difference between the MXU's default f32 matmul
    # decomposition inside the kernel and the HIGHEST-precision XLA reference.
    assert jnp.allclose(out, ref, atol=5e-3, rtol=5e-3), "mismatch vs JAX reference"

    # TODO(synk): kl_loss() (KL between posterior and prior) is training-only
    # bookkeeping, not part of the forward hot path; not implemented.
    # TODO(synk): get_sig / fc_sig second head and the get_emb early-return are
    # disabled by default in the module and not implemented here.
    print("KERNEL_OK")
</pallas_src>

<mosaic_0001>
module attributes {stable_mosaic.version = 11 : i64} {
  func.func @bbb_mlp_kernel(%arg0: i32, %arg1: memref<8x16xf32, #tpu.memory_space<vmem>>, %arg2: memref<16x32xf32, #tpu.memory_space<vmem>>, %arg3: memref<16x32xf32, #tpu.memory_space<vmem>>, %arg4: memref<16x32xf32, #tpu.memory_space<vmem>>, %arg5: memref<1x32xf32, #tpu.memory_space<vmem>>, %arg6: memref<1x32xf32, #tpu.memory_space<vmem>>, %arg7: memref<1x32xf32, #tpu.memory_space<vmem>>, %arg8: memref<32x32xf32, #tpu.memory_space<vmem>>, %arg9: memref<32x32xf32, #tpu.memory_space<vmem>>, %arg10: memref<32x32xf32, #tpu.memory_space<vmem>>, %arg11: memref<1x32xf32, #tpu.memory_space<vmem>>, %arg12: memref<1x32xf32, #tpu.memory_space<vmem>>, %arg13: memref<1x32xf32, #tpu.memory_space<vmem>>, %arg14: memref<32x128xf32, #tpu.memory_space<vmem>>, %arg15: memref<32x128xf32, #tpu.memory_space<vmem>>, %arg16: memref<32x128xf32, #tpu.memory_space<vmem>>, %arg17: memref<1x128xf32, #tpu.memory_space<vmem>>, %arg18: memref<1x128xf32, #tpu.memory_space<vmem>>, %arg19: memref<1x128xf32, #tpu.memory_space<vmem>>, %arg20: memref<128x128xf32, #tpu.memory_space<vmem>>, %arg21: memref<128x128xf32, #tpu.memory_space<vmem>>, %arg22: memref<128x128xf32, #tpu.memory_space<vmem>>, %arg23: memref<1x128xf32, #tpu.memory_space<vmem>>, %arg24: memref<1x128xf32, #tpu.memory_space<vmem>>, %arg25: memref<1x128xf32, #tpu.memory_space<vmem>>, %arg26: memref<8x128xf32, #tpu.memory_space<vmem>>, %arg27: memref<16x32xf32, #tpu.memory_space<vmem>>, %arg28: memref<1x32xf32, #tpu.memory_space<vmem>>, %arg29: memref<32x32xf32, #tpu.memory_space<vmem>>, %arg30: memref<1x32xf32, #tpu.memory_space<vmem>>, %arg31: memref<32x128xf32, #tpu.memory_space<vmem>>, %arg32: memref<1x128xf32, #tpu.memory_space<vmem>>, %arg33: memref<128x128xf32, #tpu.memory_space<vmem>>, %arg34: memref<1x128xf32, #tpu.memory_space<vmem>>) attributes {dimension_semantics = [#tpu.dimension_semantics<arbitrary>], iteration_bounds = array<i64: 1>, scalar_prefetch = 0 : i64, scratch_operands = 8 : i64, tpu.core_type = #tpu.core_type<tc>, window_params = [{transform_indices = @transform_0, window_bounds = array<i64: 8, 16>}, {pipeline_mode = #tpu.pipeline_mode<synchronous>, transform_indices = @transform_1, window_bounds = array<i64: 16, 32>}, {pipeline_mode = #tpu.pipeline_mode<synchronous>, transform_indices = @transform_2, window_bounds = array<i64: 16, 32>}, {pipeline_mode = #tpu.pipeline_mode<synchronous>, transform_indices = @transform_3, window_bounds = array<i64: 16, 32>}, {pipeline_mode = #tpu.pipeline_mode<synchronous>, transform_indices = @transform_4, window_bounds = array<i64: 1, 32>}, {pipeline_mode = #tpu.pipeline_mode<synchronous>, transform_indices = @transform_5, window_bounds = array<i64: 1, 32>}, {pipeline_mode = #tpu.pipeline_mode<synchronous>, transform_indices = @transform_6, window_bounds = array<i64: 1, 32>}, {pipeline_mode = #tpu.pipeline_mode<synchronous>, transform_indices = @transform_7, window_bounds = array<i64: 32, 32>}, {pipeline_mode = #tpu.pipeline_mode<synchronous>, transform_indices = @transform_8, window_bounds = array<i64: 32, 32>}, {pipeline_mode = #tpu.pipeline_mode<synchronous>, transform_indices = @transform_9, window_bounds = array<i64: 32, 32>}, {pipeline_mode = #tpu.pipeline_mode<synchronous>, transform_indices = @transform_10, window_bounds = array<i64: 1, 32>}, {pipeline_mode = #tpu.pipeline_mode<synchronous>, transform_indices = @transform_11, window_bounds = array<i64: 1, 32>}, {pipeline_mode = #tpu.pipeline_mode<synchronous>, transform_indices = @transform_12, window_bounds = array<i64: 1, 32>}, {pipeline_mode = #tpu.pipeline_mode<synchronous>, transform_indices = @transform_13, window_bounds = array<i64: 32, 128>}, {pipeline_mode = #tpu.pipeline_mode<synchronous>, transform_indices = @transform_14, window_bounds = array<i64: 32, 128>}, {pipeline_mode = #tpu.pipeline_mode<synchronous>, transform_indices = @transform_15, window_bounds = array<i64: 32, 128>}, {pipeline_mode = #tpu.pipeline_mode<synchronous>, transform_indices = @transform_16, window_bounds = array<i64: 1, 128>}, {pipeline_mode = #tpu.pipeline_mode<synchronous>, transform_indices = @transform_17, window_bounds = array<i64: 1, 128>}, {pipeline_mode = #tpu.pipeline_mode<synchronous>, transform_indices = @transform_18, window_bounds = array<i64: 1, 128>}, {pipeline_mode = #tpu.pipeline_mode<synchronous>, transform_indices = @transform_19, window_bounds = array<i64: 128, 128>}, {pipeline_mode = #tpu.pipeline_mode<synchronous>, transform_indices = @transform_20, window_bounds = array<i64: 128, 128>}, {pipeline_mode = #tpu.pipeline_mode<synchronous>, transform_indices = @transform_21, window_bounds = array<i64: 128, 128>}, {pipeline_mode = #tpu.pipeline_mode<synchronous>, transform_indices = @transform_22, window_bounds = array<i64: 1, 128>}, {pipeline_mode = #tpu.pipeline_mode<synchronous>, transform_indices = @transform_23, window_bounds = array<i64: 1, 128>}, {pipeline_mode = #tpu.pipeline_mode<synchronous>, transform_indices = @transform_24, window_bounds = array<i64: 1, 128>}, {transform_indices = @transform_25, window_bounds = array<i64: 8, 128>}]} {
    %c0_i32 = arith.constant 0 : i32
    %0 = arith.cmpi eq, %arg0, %c0_i32 : i32
    %1 = arith.extui %0 : i1 to i32
    %c0_i32_0 = arith.constant 0 : i32
    %2 = arith.cmpi ne, %1, %c0_i32_0 : i32
    scf.if %2 {
      %c0_26 = arith.constant 0 : index
      %c0_27 = arith.constant 0 : index
      %40 = vector.load %arg2[%c0_26, %c0_27] : memref<16x32xf32, #tpu.memory_space<vmem>>, vector<16x32xf32>
      %c0_28 = arith.constant 0 : index
      %c0_29 = arith.constant 0 : index
      %41 = vector.load %arg4[%c0_28, %c0_29] : memref<16x32xf32, #tpu.memory_space<vmem>>, vector<16x32xf32>
      %c0_30 = arith.constant 0 : index
      %c0_31 = arith.constant 0 : index
      %42 = vector.load %arg3[%c0_30, %c0_31] : memref<16x32xf32, #tpu.memory_space<vmem>>, vector<16x32xf32>
      %43 = math.exp %42 : vector<16x32xf32>
      %44 = math.log1p %43 : vector<16x32xf32>
      %45 = arith.mulf %41, %44 : vector<16x32xf32>
      %46 = arith.addf %40, %45 : vector<16x32xf32>
      %c0_32 = arith.constant 0 : index
      %c0_33 = arith.constant 0 : index
      %47 = vector.load %arg27[%c0_32, %c0_33] : memref<16x32xf32, #tpu.memory_space<vmem>>, vector<16x32xf32>
      tpu.vector_store %arg27[%c0_32, %c0_33], %46 {strides = array<i32>} : memref<16x32xf32, #tpu.memory_space<vmem>>, vector<16x32xf32>,
      %c0_34 = arith.constant 0 : index
      %c0_35 = arith.constant 0 : index
      %48 = vector.load %arg5[%c0_34, %c0_35] : memref<1x32xf32, #tpu.memory_space<vmem>>, vector<1x32xf32>
      %c0_36 = arith.constant 0 : index
      %c0_37 = arith.constant 0 : index
      %49 = vector.load %arg7[%c0_36, %c0_37] : memref<1x32xf32, #tpu.memory_space<vmem>>, vector<1x32xf32>
      %c0_38 = arith.constant 0 : index
      %c0_39 = arith.constant 0 : index
      %50 = vector.load %arg6[%c0_38, %c0_39] : memref<1x32xf32, #tpu.memory_space<vmem>>, vector<1x32xf32>
      %51 = math.exp %50 : vector<1x32xf32>
      %52 = math.log1p %51 : vector<1x32xf32>
      %53 = arith.mulf %49, %52 : vector<1x32xf32>
      %54 = arith.addf %48, %53 : vector<1x32xf32>
      %c0_40 = arith.constant 0 : index
      %c0_41 = arith.constant 0 : index
      %55 = vector.load %arg28[%c0_40, %c0_41] : memref<1x32xf32, #tpu.memory_space<vmem>>, vector<1x32xf32>
      tpu.vector_store %arg28[%c0_40, %c0_41], %54 {strides = array<i32>} : memref<1x32xf32, #tpu.memory_space<vmem>>, vector<1x32xf32>,
      %c0_42 = arith.constant 0 : index
      %c0_43 = arith.constant 0 : index
      %56 = vector.load %arg8[%c0_42, %c0_43] : memref<32x32xf32, #tpu.memory_space<vmem>>, vector<32x32xf32>
      %c0_44 = arith.constant 0 : index
      %c0_45 = arith.constant 0 : index
      %57 = vector.load %arg10[%c0_44, %c0_45] : memref<32x32xf32, #tpu.memory_space<vmem>>, vector<32x32xf32>
      %c0_46 = arith.constant 0 : index
      %c0_47 = arith.constant 0 : index
      %58 = vector.load %arg9[%c0_46, %c0_47] : memref<32x32xf32, #tpu.memory_space<vmem>>, vector<32x32xf32>
      %59 = math.exp %58 : vector<32x32xf32>
      %60 = math.log1p %59 : vector<32x32xf32>
      %61 = arith.mulf %57, %60 : vector<32x32xf32>
      %62 = arith.addf %56, %61 : vector<32x32xf32>
      %c0_48 = arith.constant 0 : index
      %c0_49 = arith.constant 0 : index
      %63 = vector.load %arg29[%c0_48, %c0_49] : memref<32x32xf32, #tpu.memory_space<vmem>>, vector<32x32xf32>
      tpu.vector_store %arg29[%c0_48, %c0_49], %62 {strides = array<i32>} : memref<32x32xf32, #tpu.memory_space<vmem>>, vector<32x32xf32>,
      %c0_50 = arith.constant 0 : index
      %c0_51 = arith.constant 0 : index
      %64 = vector.load %arg11[%c0_50, %c0_51] : memref<1x32xf32, #tpu.memory_space<vmem>>, vector<1x32xf32>
      %c0_52 = arith.constant 0 : index
      %c0_53 = arith.constant 0 : index
      %65 = vector.load %arg13[%c0_52, %c0_53] : memref<1x32xf32, #tpu.memory_space<vmem>>, vector<1x32xf32>
      %c0_54 = arith.constant 0 : index
      %c0_55 = arith.constant 0 : index
      %66 = vector.load %arg12[%c0_54, %c0_55] : memref<1x32xf32, #tpu.memory_space<vmem>>, vector<1x32xf32>
      %67 = math.exp %66 : vector<1x32xf32>
      %68 = math.log1p %67 : vector<1x32xf32>
      %69 = arith.mulf %65, %68 : vector<1x32xf32>
      %70 = arith.addf %64, %69 : vector<1x32xf32>
      %c0_56 = arith.constant 0 : index
      %c0_57 = arith.constant 0 : index
      %71 = vector.load %arg30[%c0_56, %c0_57] : memref<1x32xf32, #tpu.memory_space<vmem>>, vector<1x32xf32>
      tpu.vector_store %arg30[%c0_56, %c0_57], %70 {strides = array<i32>} : memref<1x32xf32, #tpu.memory_space<vmem>>, vector<1x32xf32>,
      %c0_58 = arith.constant 0 : index
      %c0_59 = arith.constant 0 : index
      %72 = vector.load %arg14[%c0_58, %c0_59] : memref<32x128xf32, #tpu.memory_space<vmem>>, vector<32x128xf32>
      %c0_60 = arith.constant 0 : index
      %c0_61 = arith.constant 0 : index
      %73 = vector.load %arg16[%c0_60, %c0_61] : memref<32x128xf32, #tpu.memory_space<vmem>>, vector<32x128xf32>
      %c0_62 = arith.constant 0 : index
      %c0_63 = arith.constant 0 : index
      %74 = vector.load %arg15[%c0_62, %c0_63] : memref<32x128xf32, #tpu.memory_space<vmem>>, vector<32x128xf32>
      %75 = math.exp %74 : vector<32x128xf32>
      %76 = math.log1p %75 : vector<32x128xf32>
      %77 = arith.mulf %73, %76 : vector<32x128xf32>
      %78 = arith.addf %72, %77 : vector<32x128xf32>
      %c0_64 = arith.constant 0 : index
      %c0_65 = arith.constant 0 : index
      %79 = vector.load %arg31[%c0_64, %c0_65] : memref<32x128xf32, #tpu.memory_space<vmem>>, vector<32x128xf32>
      tpu.vector_store %arg31[%c0_64, %c0_65], %78 {strides = array<i32>} : memref<32x128xf32, #tpu.memory_space<vmem>>, vector<32x128xf32>,
      %c0_66 = arith.constant 0 : index
      %c0_67 = arith.constant 0 : index
      %80 = vector.load %arg17[%c0_66, %c0_67] : memref<1x128xf32, #tpu.memory_space<vmem>>, vector<1x128xf32>
      %c0_68 = arith.constant 0 : index
      %c0_69 = arith.constant 0 : index
      %81 = vector.load %arg19[%c0_68, %c0_69] : memref<1x128xf32, #tpu.memory_space<vmem>>, vector<1x128xf32>
      %c0_70 = arith.constant 0 : index
      %c0_71 = arith.constant 0 : index
      %82 = vector.load %arg18[%c0_70, %c0_71] : memref<1x128xf32, #tpu.memory_space<vmem>>, vector<1x128xf32>
      %83 = math.exp %82 : vector<1x128xf32>
      %84 = math.log1p %83 : vector<1x128xf32>
      %85 = arith.mulf %81, %84 : vector<1x128xf32>
      %86 = arith.addf %80, %85 : vector<1x128xf32>
      %c0_72 = arith.constant 0 : index
      %c0_73 = arith.constant 0 : index
      %87 = vector.load %arg32[%c0_72, %c0_73] : memref<1x128xf32, #tpu.memory_space<vmem>>, vector<1x128xf32>
      tpu.vector_store %arg32[%c0_72, %c0_73], %86 {strides = array<i32>} : memref<1x128xf32, #tpu.memory_space<vmem>>, vector<1x128xf32>,
      %c0_74 = arith.constant 0 : index
      %c0_75 = arith.constant 0 : index
      %88 = vector.load %arg20[%c0_74, %c0_75] : memref<128x128xf32, #tpu.memory_space<vmem>>, vector<128x128xf32>
      %c0_76 = arith.constant 0 : index
      %c0_77 = arith.constant 0 : index
      %89 = vector.load %arg22[%c0_76, %c0_77] : memref<128x128xf32, #tpu.memory_space<vmem>>, vector<128x128xf32>
      %c0_78 = arith.constant 0 : index
      %c0_79 = arith.constant 0 : index
      %90 = vector.load %arg21[%c0_78, %c0_79] : memref<128x128xf32, #tpu.memory_space<vmem>>, vector<128x128xf32>
      %91 = math.exp %90 : vector<128x128xf32>
      %92 = math.log1p %91 : vector<128x128xf32>
      %93 = arith.mulf %89, %92 : vector<128x128xf32>
      %94 = arith.addf %88, %93 : vector<128x128xf32>
      %c0_80 = arith.constant 0 : index
      %c0_81 = arith.constant 0 : index
      %95 = vector.load %arg33[%c0_80, %c0_81] : memref<128x128xf32, #tpu.memory_space<vmem>>, vector<128x128xf32>
      tpu.vector_store %arg33[%c0_80, %c0_81], %94 {strides = array<i32>} : memref<128x128xf32, #tpu.memory_space<vmem>>, vector<128x128xf32>,
      %c0_82 = arith.constant 0 : index
      %c0_83 = arith.constant 0 : index
      %96 = vector.load %arg23[%c0_82, %c0_83] : memref<1x128xf32, #tpu.memory_space<vmem>>, vector<1x128xf32>
      %c0_84 = arith.constant 0 : index
      %c0_85 = arith.constant 0 : index
      %97 = vector.load %arg25[%c0_84, %c0_85] : memref<1x128xf32, #tpu.memory_space<vmem>>, vector<1x128xf32>
      %c0_86 = arith.constant 0 : index
      %c0_87 = arith.constant 0 : index
      %98 = vector.load %arg24[%c0_86, %c0_87] : memref<1x128xf32, #tpu.memory_space<vmem>>, vector<1x128xf32>
      %99 = math.exp %98 : vector<1x128xf32>
      %100 = math.log1p %99 : vector<1x128xf32>
      %101 = arith.mulf %97, %100 : vector<1x128xf32>
      %102 = arith.addf %96, %101 : vector<1x128xf32>
      %c0_88 = arith.constant 0 : index
      %c0_89 = arith.constant 0 : index
      %103 = vector.load %arg34[%c0_88, %c0_89] : memref<1x128xf32, #tpu.memory_space<vmem>>, vector<1x128xf32>
      tpu.vector_store %arg34[%c0_88, %c0_89], %102 {strides = array<i32>} : memref<1x128xf32, #tpu.memory_space<vmem>>, vector<1x128xf32>,
    } else {
    }
    %c0 = arith.constant 0 : index
    %c0_1 = arith.constant 0 : index
    %3 = vector.load %arg1[%c0, %c0_1] : memref<8x16xf32, #tpu.memory_space<vmem>>, vector<8x16xf32>
    %c0_2 = arith.constant 0 : index
    %c0_3 = arith.constant 0 : index
    %4 = vector.load %arg27[%c0_2, %c0_3] : memref<16x32xf32, #tpu.memory_space<vmem>>, vector<16x32xf32>
    %cst = arith.constant dense<0.000000e+00> : vector<8x32xf32>
    %5 = tpu.matmul %3, %4, %cst {dimension_numbers = #tpu.dot_dimension_numbers<[1], [0], [0], [1], [0, 0, 1, 1], [], []>} : vector<8x16xf32>, vector<16x32xf32>, vector<8x32xf32> -> vector<8x32xf32>
    %c0_4 = arith.constant 0 : index
    %c0_5 = arith.constant 0 : index
    %6 = vector.load %arg28[%c0_4, %c0_5] : memref<1x32xf32, #tpu.memory_space<vmem>>, vector<1x32xf32>
    %7 = vector.broadcast %6 : vector<1x32xf32> to vector<8x32xf32>
    %8 = arith.addf %5, %7 : vector<8x32xf32>
    %cst_6 = arith.constant 2.000000e+01 : f32
    %9 = vector.broadcast %cst_6 : f32 to vector<8x32xf32>
    %10 = arith.cmpf ogt, %8, %9 : vector<8x32xf32>
    %11 = math.exp %8 : vector<8x32xf32>
    %12 = math.log1p %11 : vector<8x32xf32>
    %13 = arith.select %10, %8, %12 : vector<8x32xi1>, vector<8x32xf32>
    %c0_7 = arith.constant 0 : index
    %c0_8 = arith.constant 0 : index
    %14 = vector.load %arg29[%c0_7, %c0_8] : memref<32x32xf32, #tpu.memory_space<vmem>>, vector<32x32xf32>
    %cst_9 = arith.constant dense<0.000000e+00> : vector<8x32xf32>
    %15 = tpu.matmul %13, %14, %cst_9 {dimension_numbers = #tpu.dot_dimension_numbers<[1], [0], [0], [1], [0, 0, 1, 1], [], []>} : vector<8x32xf32>, vector<32x32xf32>, vector<8x32xf32> -> vector<8x32xf32>
    %c0_10 = arith.constant 0 : index
    %c0_11 = arith.constant 0 : index
    %16 = vector.load %arg30[%c0_10, %c0_11] : memref<1x32xf32, #tpu.memory_space<vmem>>, vector<1x32xf32>
    %17 = vector.broadcast %16 : vector<1x32xf32> to vector<8x32xf32>
    %18 = arith.addf %15, %17 : vector<8x32xf32>
    %cst_12 = arith.constant 2.000000e+01 : f32
    %19 = vector.broadcast %cst_12 : f32 to vector<8x32xf32>
    %20 = arith.cmpf ogt, %18, %19 : vector<8x32xf32>
    %21 = math.exp %18 : vector<8x32xf32>
    %22 = math.log1p %21 : vector<8x32xf32>
    %23 = arith.select %20, %18, %22 : vector<8x32xi1>, vector<8x32xf32>
    %c0_13 = arith.constant 0 : index
    %c0_14 = arith.constant 0 : index
    %24 = vector.load %arg31[%c0_13, %c0_14] : memref<32x128xf32, #tpu.memory_space<vmem>>, vector<32x128xf32>
    %cst_15 = arith.constant dense<0.000000e+00> : vector<8x128xf32>
    %25 = tpu.matmul %23, %24, %cst_15 {dimension_numbers = #tpu.dot_dimension_numbers<[1], [0], [0], [1], [0, 0, 1, 1], [], []>} : vector<8x32xf32>, vector<32x128xf32>, vector<8x128xf32> -> vector<8x128xf32>
    %c0_16 = arith.constant 0 : index
    %c0_17 = arith.constant 0 : index
    %26 = vector.load %arg32[%c0_16, %c0_17] : memref<1x128xf32, #tpu.memory_space<vmem>>, vector<1x128xf32>
    %27 = vector.broadcast %26 : vector<1x128xf32> to vector<8x128xf32>
    %28 = arith.addf %25, %27 : vector<8x128xf32>
    %cst_18 = arith.constant 2.000000e+01 : f32
    %29 = vector.broadcast %cst_18 : f32 to vector<8x128xf32>
    %30 = arith.cmpf ogt, %28, %29 : vector<8x128xf32>
    %31 = math.exp %28 : vector<8x128xf32>
    %32 = math.log1p %31 : vector<8x128xf32>
    %33 = arith.select %30, %28, %32 : vector<8x128xi1>, vector<8x128xf32>
    %c0_19 = arith.constant 0 : index
    %c0_20 = arith.constant 0 : index
    %34 = vector.load %arg33[%c0_19, %c0_20] : memref<128x128xf32, #tpu.memory_space<vmem>>, vector<128x128xf32>
    %cst_21 = arith.constant dense<0.000000e+00> : vector<8x128xf32>
    %35 = tpu.matmul %33, %34, %cst_21 {dimension_numbers = #tpu.dot_dimension_numbers<[1], [0], [0], [1], [0, 0, 1, 1], [], []>} : vector<8x128xf32>, vector<128x128xf32>, vector<8x128xf32> -> vector<8x128xf32>
    %c0_22 = arith.constant 0 : index
    %c0_23 = arith.constant 0 : index
    %36 = vector.load %arg34[%c0_22, %c0_23] : memref<1x128xf32, #tpu.memory_space<vmem>>, vector<1x128xf32>
    %37 = vector.broadcast %36 : vector<1x128xf32> to vector<8x128xf32>
    %38 = arith.addf %35, %37 : vector<8x128xf32>
    %c0_24 = arith.constant 0 : index
    %c0_25 = arith.constant 0 : index
    %39 = vector.load %arg26[%c0_24, %c0_25] : memref<8x128xf32, #tpu.memory_space<vmem>>, vector<8x128xf32>
    tpu.vector_store %arg26[%c0_24, %c0_25], %38 {strides = array<i32>} : memref<8x128xf32, #tpu.memory_space<vmem>>, vector<8x128xf32>,
    return
  }
  func.func @transform_0(%arg0: i32) -> (i32, i32) {
    %c0_i32 = arith.constant 0 : i32
    %c0_i32_0 = arith.constant 0 : i32
    return %arg0, %c0_i32 : i32, i32
  }
  func.func @transform_1(%arg0: i32) -> (i32, i32) {
    %c0_i32 = arith.constant 0 : i32
    %c0_i32_0 = arith.constant 0 : i32
    %c0_i32_1 = arith.constant 0 : i32
    return %c0_i32, %c0_i32_0 : i32, i32
  }
  func.func @transform_2(%arg0: i32) -> (i32, i32) {
    %c0_i32 = arith.constant 0 : i32
    %c0_i32_0 = arith.constant 0 : i32
    %c0_i32_1 = arith.constant 0 : i32
    return %c0_i32, %c0_i32_0 : i32, i32
  }
  func.func @transform_3(%arg0: i32) -> (i32, i32) {
    %c0_i32 = arith.constant 0 : i32
    %c0_i32_0 = arith.constant 0 : i32
    %c0_i32_1 = arith.constant 0 : i32
    return %c0_i32, %c0_i32_0 : i32, i32
  }
  func.func @transform_4(%arg0: i32) -> (i32, i32) {
    %c0_i32 = arith.constant 0 : i32
    %c0_i32_0 = arith.constant 0 : i32
    %c0_i32_1 = arith.constant 0 : i32
    return %c0_i32, %c0_i32_0 : i32, i32
  }
  func.func @transform_5(%arg0: i32) -> (i32, i32) {
    %c0_i32 = arith.constant 0 : i32
    %c0_i32_0 = arith.constant 0 : i32
    %c0_i32_1 = arith.constant 0 : i32
    return %c0_i32, %c0_i32_0 : i32, i32
  }
  func.func @transform_6(%arg0: i32) -> (i32, i32) {
    %c0_i32 = arith.constant 0 : i32
    %c0_i32_0 = arith.constant 0 : i32
    %c0_i32_1 = arith.constant 0 : i32
    return %c0_i32, %c0_i32_0 : i32, i32
  }
  func.func @transform_7(%arg0: i32) -> (i32, i32) {
    %c0_i32 = arith.constant 0 : i32
    %c0_i32_0 = arith.constant 0 : i32
    %c0_i32_1 = arith.constant 0 : i32
    return %c0_i32, %c0_i32_0 : i32, i32
  }
  func.func @transform_8(%arg0: i32) -> (i32, i32) {
    %c0_i32 = arith.constant 0 : i32
    %c0_i32_0 = arith.constant 0 : i32
    %c0_i32_1 = arith.constant 0 : i32
    return %c0_i32, %c0_i32_0 : i32, i32
  }
  func.func @transform_9(%arg0: i32) -> (i32, i32) {
    %c0_i32 = arith.constant 0 : i32
    %c0_i32_0 = arith.constant 0 : i32
    %c0_i32_1 = arith.constant 0 : i32
    return %c0_i32, %c0_i32_0 : i32, i32
  }
  func.func @transform_10(%arg0: i32) -> (i32, i32) {
    %c0_i32 = arith.constant 0 : i32
    %c0_i32_0 = arith.constant 0 : i32
    %c0_i32_1 = arith.constant 0 : i32
    return %c0_i32, %c0_i32_0 : i32, i32
  }
  func.func @transform_11(%arg0: i32) -> (i32, i32) {
    %c0_i32 = arith.constant 0 : i32
    %c0_i32_0 = arith.constant 0 : i32
    %c0_i32_1 = arith.constant 0 : i32
    return %c0_i32, %c0_i32_0 : i32, i32
  }
  func.func @transform_12(%arg0: i32) -> (i32, i32) {
    %c0_i32 = arith.constant 0 : i32
    %c0_i32_0 = arith.constant 0 : i32
    %c0_i32_1 = arith.constant 0 : i32
    return %c0_i32, %c0_i32_0 : i32, i32
  }
  func.func @transform_13(%arg0: i32) -> (i32, i32) {
    %c0_i32 = arith.constant 0 : i32
    %c0_i32_0 = arith.constant 0 : i32
    %c0_i32_1 = arith.constant 0 : i32
    return %c0_i32, %c0_i32_0 : i32, i32
  }
  func.func @transform_14(%arg0: i32) -> (i32, i32) {
    %c0_i32 = arith.constant 0 : i32
    %c0_i32_0 = arith.constant 0 : i32
    %c0_i32_1 = arith.constant 0 : i32
    return %c0_i32, %c0_i32_0 : i32, i32
  }
  func.func @transform_15(%arg0: i32) -> (i32, i32) {
    %c0_i32 = arith.constant 0 : i32
    %c0_i32_0 = arith.constant 0 : i32
    %c0_i32_1 = arith.constant 0 : i32
    return %c0_i32, %c0_i32_0 : i32, i32
  }
  func.func @transform_16(%arg0: i32) -> (i32, i32) {
    %c0_i32 = arith.constant 0 : i32
    %c0_i32_0 = arith.constant 0 : i32
    %c0_i32_1 = arith.constant 0 : i32
    return %c0_i32, %c0_i32_0 : i32, i32
  }
  func.func @transform_17(%arg0: i32) -> (i32, i32) {
    %c0_i32 = arith.constant 0 : i32
    %c0_i32_0 = arith.constant 0 : i32
    %c0_i32_1 = arith.constant 0 : i32
    return %c0_i32, %c0_i32_0 : i32, i32
  }
  func.func @transform_18(%arg0: i32) -> (i32, i32) {
    %c0_i32 = arith.constant 0 : i32
    %c0_i32_0 = arith.constant 0 : i32
    %c0_i32_1 = arith.constant 0 : i32
    return %c0_i32, %c0_i32_0 : i32, i32
  }
  func.func @transform_19(%arg0: i32) -> (i32, i32) {
    %c0_i32 = arith.constant 0 : i32
    %c0_i32_0 = arith.constant 0 : i32
    %c0_i32_1 = arith.constant 0 : i32
    return %c0_i32, %c0_i32_0 : i32, i32
  }
  func.func @transform_20(%arg0: i32) -> (i32, i32) {
    %c0_i32 = arith.constant 0 : i32
    %c0_i32_0 = arith.constant 0 : i32
    %c0_i32_1 = arith.constant 0 : i32
    return %c0_i32, %c0_i32_0 : i32, i32
  }
  func.func @transform_21(%arg0: i32) -> (i32, i32) {
    %c0_i32 = arith.constant 0 : i32
    %c0_i32_0 = arith.constant 0 : i32
    %c0_i32_1 = arith.constant 0 : i32
    return %c0_i32, %c0_i32_0 : i32, i32
  }
  func.func @transform_22(%arg0: i32) -> (i32, i32) {
    %c0_i32 = arith.constant 0 : i32
    %c0_i32_0 = arith.constant 0 : i32
    %c0_i32_1 = arith.constant 0 : i32
    return %c0_i32, %c0_i32_0 : i32, i32
  }
  func.func @transform_23(%arg0: i32) -> (i32, i32) {
    %c0_i32 = arith.constant 0 : i32
    %c0_i32_0 = arith.constant 0 : i32
    %c0_i32_1 = arith.constant 0 : i32
    return %c0_i32, %c0_i32_0 : i32, i32
  }
  func.func @transform_24(%arg0: i32) -> (i32, i32) {
    %c0_i32 = arith.constant 0 : i32
    %c0_i32_0 = arith.constant 0 : i32
    %c0_i32_1 = arith.constant 0 : i32
    return %c0_i32, %c0_i32_0 : i32, i32
  }
  func.func @transform_25(%arg0: i32) -> (i32, i32) {
    %c0_i32 = arith.constant 0 : i32
    %c0_i32_0 = arith.constant 0 : i32
    return %arg0, %c0_i32 : i32, i32
  }
}

</mosaic_0001>

<bundles_post_ra>
// kernel: tpu_custom_call.1
= control target key start
LH: loop header
LB: loop body
LE: loop exit
PB: predicated region body
PF: predicated region fallthrough
CT: control target
= control target key end

     0   :  { %s2355_s0 = inlined_call_operand.hbm [shape: f32[8,16], index: 0, kind: input, shape index: {}]   ;;  %s2356_s1 = inlined_call_operand.hbm [shape: f32[16,32], index: 1, kind: input, shape index: {}]   ;;  %s2357_s2 = inlined_call_operand.hbm [shape: f32[16,32], index: 2, kind: input, shape index: {}]   ;;  %s2358_s3 = inlined_call_operand.hbm [shape: f32[16,32], index: 3, kind: input, shape index: {}]   ;;  %s2359_s4 = inlined_call_operand.vmem [shape: f32[1,32], index: 4, kind: input, shape index: {}]   ;;  %s2360_s5 = inlined_call_operand.vmem [shape: f32[1,32], index: 5, kind: input, shape index: {}]   ;;  %s2361_s6 = inlined_call_operand.hbm [shape: f32[1,32], index: 6, kind: input, shape index: {}]   ;;  %s2362_s7 = inlined_call_operand.hbm [shape: f32[32,32], index: 7, kind: input, shape index: {}]   ;;  %s2363_s8 = inlined_call_operand.hbm [shape: f32[32,32], index: 8, kind: input, shape index: {}]   ;;  %s2364_s9 = inlined_call_operand.vmem [shape: f32[32,32], index: 9, kind: input, shape index: {}]   ;;  %s2365_s10 = inlined_call_operand.vmem [shape: f32[1,32], index: 10, kind: input, shape index: {}]   ;;  %s2366_s11 = inlined_call_operand.vmem [shape: f32[1,32], index: 11, kind: input, shape index: {}]   ;;  %s2367_s12 = inlined_call_operand.vmem [shape: f32[1,32], index: 12, kind: input, shape index: {}]   ;;  %s2368_s13 = inlined_call_operand.hbm [shape: f32[32,128], index: 13, kind: input, shape index: {}]   ;;  %s2369_s14 = inlined_call_operand.hbm [shape: f32[32,128], index: 14, kind: input, shape index: {}]   ;;  %s2370_s15 = inlined_call_operand.hbm [shape: f32[32,128], index: 15, kind: input, shape index: {}]   ;;  %s2371_s16 = inlined_call_operand.vmem [shape: f32[1,128], index: 16, kind: input, shape index: {}]   ;;  %s2372_s17 = inlined_call_operand.vmem [shape: f32[1,128], index: 17, kind: input, shape index: {}]   ;;  %s2373_s18 = inlined_call_operand.vmem [shape: f32[1,128], index: 18, kind: input, shape index: {}]   ;;  %s2374_s19 = inlined_call_operand.hbm [shape: f32[128,128], index: 19, kind: input, shape index: {}]   ;;  %s2375_s20 = inlined_call_operand.hbm [shape: f32[128,128], index: 20, kind: input, shape index: {}]   ;;  %s2376_s21 = inlined_call_operand.hbm [shape: f32[128,128], index: 21, kind: input, shape index: {}]   ;;  %s2377_s22 = inlined_call_operand.vmem [shape: f32[1,128], index: 22, kind: input, shape index: {}]   ;;  %s2378_s23 = inlined_call_operand.vmem [shape: f32[1,128], index: 23, kind: input, shape index: {}]   ;;  %s2379_s24 = inlined_call_operand.vmem [shape: f32[1,128], index: 24, kind: input, shape index: {}]   ;;  %s2380_s25 = inlined_call_operand.hbm [shape: f32[8,128], index: 25, kind: output, shape index: {}]  }
   0x1   :  { %2390 = sst [smem:[#allocation40_spill]] %s2355_s0 }
   0x2   :  { %2391 = sst [smem:[#allocation41_spill]] %s2356_s1 }
   0x3   :  { %2392 = sst [smem:[#allocation42_spill]] %s2357_s2 }
   0x4   :  { %2393 = sst [smem:[#allocation43_spill]] %s2358_s3 }
   0x5   :  { %2394 = sst [smem:[#allocation44_spill]] %s2359_s4 }
   0x6   :  { %2395 = sst [smem:[#allocation45_spill]] %s2360_s5 }
   0x7   :  { %2396 = sst [smem:[#allocation46_spill]] %s2361_s6 }
   0x8   :  { %2397 = sst [smem:[#allocation47_spill]] %s2362_s7 }
   0x9   :  { %2398 = sst [smem:[#allocation48_spill]] %s2363_s8 }
   0xa   :  { %2399 = sst [smem:[#allocation49_spill]] %s2364_s9 }
   0xb   :  { %2400 = sst [smem:[#allocation50_spill]] %s2377_s22 }
   0xc   :  { %2401 = sst [smem:[#allocation51_spill]] %s2379_s24 }
   0xd   :  { %2402 = sst [smem:[#allocation52_spill]] %s2380_s25 }
   0xe   :  { %30 = vsyncpa [#allocation11], 0 }
   0xf   :  { %31 = vsyncpa [#allocation14], 0 }
  0x10   :  { %32 = vsyncpa [#allocation17], 0 }
  0x11   :  { %33 = vsyncpa [#allocation20], 0 }
  0x12   :  { %34 = vsyncpa [#allocation23], 0 }
  0x13   :  { %35 = vsyncpa [#allocation26], 0 }
  0x14   :  { %36 = vsyncpa [#allocation29], 0 }
  0x15   :  { %37 = vsyncpa [#allocation12], 0  ;;  %s1791_s29 = smov [#allocation13]   ;;  %s2403_s7 = sld [smem:[#allocation41_spill]] }
  0x16   :  { %s53_s2 = sshll.u32 %s1791_s29, 4  ;;  %s54_s2 = int_to_ptr.vmem [resolvable:$true] %s53_s2 }
  0x1b   :  { %s1467_s3 = scalar_lea.hbm %s2403_s7, 256 }
  0x1c   :  { %p1468_p0 = scmp.ne.s32.totalorder %s2403_s7, %s1467_s3  ;;  %p1471_p1 = scmp.lt.u32.totalorder %s1467_s3, %s2403_s7 }
  0x1e   :  { %p1473_p2 = pnand %p1471_p1, %p1468_p0 }
  0x20   :  { %1476 = shalt.err (!%p1473_p2)
}
  0x21   :  { %s1477_s4 = scalar_lea.vmem %s54_s2, 256  ;;  %p1482_p4 = scmp.lt.s32.totalorder %s54_s2, %s54_s2 }
  0x22   :  { %p1478_p3 = scmp.ne.s32.totalorder %s54_s2, %s1477_s4  ;;  %p1483_p5 = scmp.lt.s32.totalorder %s1477_s4, %s1477_s4 }
  0x24   :  { %p1484_p6 = por %p1483_p5, %p1482_p4 }
  0x26   :  { %p1485_p7 = pnand %p1484_p6, %p1478_p3 }
  0x28   :  { %1488 = shalt.err (!%p1485_p7)
}
  0x29   :  { %s1792_s28 = smov 128   ;;  %s1793_s9 = smov 8  }
  0x2a   :  { %59 = dma.hbm_to_vmem [thread:$0]  %s2403_s7, 256, %s54_s2, [#allocation14], %s1792_s28, %s1792_s28, %s1793_s9  }
  0x2b   :  { %s1794_s29 = smov [#allocation16]   ;;  %s1795_s30 = smov [#allocation19]  }
  0x2c   :  { %s77_s6 = sshll.u32 %s1794_s29, 4  ;;  %s103_s3 = sshll.u32 %s1795_s30, 4  ;;  %s78_s6 = int_to_ptr.vmem [resolvable:$true] %s77_s6  ;;  %s104_s3 = int_to_ptr.vmem [resolvable:$true] %s103_s3 }
  0x2d   :  { %s2404_s8 = sld [smem:[#allocation43_spill]] }
  0x33   :  { %s1489_s27 = scalar_lea.hbm %s2404_s8, 256 }
  0x34   :  { %p1490_p8 = scmp.ne.s32.totalorder %s2404_s8, %s1489_s27  ;;  %p1493_p9 = scmp.lt.u32.totalorder %s1489_s27, %s2404_s8 }
  0x36   :  { %p1495_p10 = pnand %p1493_p9, %p1490_p8 }
  0x38   :  { %1498 = shalt.err (!%p1495_p10)
}
  0x39   :  { %s1499_s2 = scalar_lea.vmem %s78_s6, 256  ;;  %p1504_p12 = scmp.lt.s32.totalorder %s78_s6, %s78_s6 }
  0x3a   :  { %p1500_p11 = scmp.ne.s32.totalorder %s78_s6, %s1499_s2  ;;  %p1505_p13 = scmp.lt.s32.totalorder %s1499_s2, %s1499_s2 }
  0x3c   :  { %p1506_p0 = por %p1505_p13, %p1504_p12 }
  0x3e   :  { %p1507_p1 = pnand %p1506_p0, %p1500_p11 }
  0x40   :  { %1510 = shalt.err (!%p1507_p1)
}
  0x41   :  { %83 = dma.hbm_to_vmem [thread:$0]  %s2404_s8, 256, %s78_s6, [#allocation17], %s1792_s28, %s1792_s28, %s1793_s9  }
  0x42   :  { %s2405_s24 = sld [smem:[#allocation47_spill]] }
  0x48   :  { %s1511_s0 = scalar_lea.hbm %s2405_s24, 512 }
  0x49   :  { %p1512_p2 = scmp.ne.s32.totalorder %s2405_s24, %s1511_s0  ;;  %p1515_p3 = scmp.lt.u32.totalorder %s1511_s0, %s2405_s24 }
  0x4b   :  { %p1517_p4 = pnand %p1515_p3, %p1512_p2 }
  0x4d   :  { %1520 = shalt.err (!%p1517_p4)
}
  0x4e   :  { %s1521_s27 = scalar_lea.vmem %s104_s3, 512  ;;  %p1526_p6 = scmp.lt.s32.totalorder %s104_s3, %s104_s3 }
  0x4f   :  { %p1522_p5 = scmp.ne.s32.totalorder %s104_s3, %s1521_s27  ;;  %p1527_p7 = scmp.lt.s32.totalorder %s1521_s27, %s1521_s27 }
  0x51   :  { %p1528_p8 = por %p1527_p7, %p1526_p6 }
  0x53   :  { %p1529_p9 = pnand %p1528_p8, %p1522_p5 }
  0x55   :  { %1532 = shalt.err (!%p1529_p9)
}
  0x56   :  { %109 = dma.hbm_to_vmem [thread:$0]  %s2405_s24, 512, %s104_s3, [#allocation20], %s1792_s28, %s1792_s28, %s1793_s9  }
  0x57   :  { %s1796_s4 = smov [#allocation22]   ;;  %s1797_s7 = smov [#allocation25]  }
  0x58   :  { %s135_s2 = sshll.u32 %s1796_s4, 4  ;;  %s159_s5 = sshll.u32 %s1797_s7, 4  ;;  %s136_s2 = int_to_ptr.vmem [resolvable:$true] %s135_s2  ;;  %s160_s5 = int_to_ptr.vmem [resolvable:$true] %s159_s5 }
  0x59   :  { %s1533_s0 = scalar_lea.hbm %s2368_s13, 512 }
  0x5a   :  { %p1534_p10 = scmp.ne.s32.totalorder %s2368_s13, %s1533_s0  ;;  %p1537_p11 = scmp.lt.u32.totalorder %s1533_s0, %s2368_s13 }
  0x5c   :  { %p1539_p12 = pnand %p1537_p11, %p1534_p10 }
  0x5e   :  { %1542 = shalt.err (!%p1539_p12)
}
  0x5f   :  { %s1543_s3 = scalar_lea.vmem %s136_s2, 512  ;;  %p1548_p0 = scmp.lt.s32.totalorder %s136_s2, %s136_s2 }
  0x60   :  { %p1544_p13 = scmp.ne.s32.totalorder %s136_s2, %s1543_s3  ;;  %p1549_p1 = scmp.lt.s32.totalorder %s1543_s3, %s1543_s3 }
  0x62   :  { %p1550_p2 = por %p1549_p1, %p1548_p0 }
  0x64   :  { %p1551_p3 = pnand %p1550_p2, %p1544_p13 }
  0x66   :  { %1554 = shalt.err (!%p1551_p3)
}
  0x67   :  { %141 = dma.hbm_to_vmem [thread:$0]  %s2368_s13, 512, %s136_s2, [#allocation23], %s1792_s28, %s1792_s28, %s1793_s9  }
  0x68   :  { %s1555_s4 = scalar_lea.hbm %s2370_s15, 512 }
  0x69   :  { %p1556_p4 = scmp.ne.s32.totalorder %s2370_s15, %s1555_s4  ;;  %p1559_p5 = scmp.lt.u32.totalorder %s1555_s4, %s2370_s15 }
  0x6b   :  { %p1561_p6 = pnand %p1559_p5, %p1556_p4 }
  0x6d   :  { %1564 = shalt.err (!%p1561_p6)
}
  0x6e   :  { %s1565_s29 = scalar_lea.vmem %s160_s5, 512  ;;  %p1570_p8 = scmp.lt.s32.totalorder %s160_s5, %s160_s5 }
  0x6f   :  { %p1566_p7 = scmp.ne.s32.totalorder %s160_s5, %s1565_s29  ;;  %p1571_p9 = scmp.lt.s32.totalorder %s1565_s29, %s1565_s29 }
  0x71   :  { %p1572_p10 = por %p1571_p9, %p1570_p8 }
  0x73   :  { %p1573_p11 = pnand %p1572_p10, %p1566_p7 }
  0x75   :  { %1576 = shalt.err (!%p1573_p11)
}
  0x76   :  { %165 = dma.hbm_to_vmem [thread:$0]  %s2370_s15, 512, %s160_s5, [#allocation26], %s1792_s28, %s1792_s28, %s1793_s9  }
  0x77   :  { %s1798_s30 = smov [#allocation28]   ;;  %s1799_s1 = smov [#allocation10]  }
  0x78   :  { %s189_s26 = sshll.u32 %s1798_s30, 4  ;;  %s44_s3 = sshll.u32 %s1799_s1, 4  ;;  %s190_s26 = int_to_ptr.vmem [resolvable:$true] %s189_s26  ;;  %s45_s3 = int_to_ptr.vmem [resolvable:$true] %s44_s3 }
  0x79   :  { %s1577_s6 = scalar_lea.hbm %s2375_s20, 2048 }
  0x7a   :  { %p1578_p12 = scmp.ne.s32.totalorder %s2375_s20, %s1577_s6  ;;  %p1581_p13 = scmp.lt.u32.totalorder %s1577_s6, %s2375_s20 }
  0x7c   :  { %p1583_p0 = pnand %p1581_p13, %p1578_p12 }
  0x7e   :  { %1586 = shalt.err (!%p1583_p0)
}
  0x7f   :  { %s1587_s15 = scalar_lea.vmem %s190_s26, 2048  ;;  %p1592_p2 = scmp.lt.s32.totalorder %s190_s26, %s190_s26 }
  0x80   :  { %p1588_p1 = scmp.ne.s32.totalorder %s190_s26, %s1587_s15  ;;  %p1593_p3 = scmp.lt.s32.totalorder %s1587_s15, %s1587_s15 }
  0x82   :  { %p1594_p4 = por %p1593_p3, %p1592_p2 }
  0x84   :  { %p1595_p5 = pnand %p1594_p4, %p1588_p1 }
  0x86   :  { %1598 = shalt.err (!%p1595_p5)
}
  0x87   :  { %195 = dma.hbm_to_vmem [thread:$0]  %s2375_s20, 2048, %s190_s26, [#allocation29], %s1792_s28, %s1792_s28, %s1793_s9  }
  0x88   :  { %s2406_s13 = sld [smem:[#allocation40_spill]] }
  0x8e   :  { %s1599_s2 = scalar_lea.hbm %s2406_s13, 128 }
  0x8f   :  { %p1600_p6 = scmp.ne.s32.totalorder %s2406_s13, %s1599_s2  ;;  %p1603_p7 = scmp.lt.u32.totalorder %s1599_s2, %s2406_s13 }
  0x91   :  { %p1605_p8 = pnand %p1603_p7, %p1600_p6 }
  0x93   :  { %1608 = shalt.err (!%p1605_p8)
}
  0x94   :  { %s1609_s6 = scalar_lea.vmem %s45_s3, 128  ;;  %p1614_p10 = scmp.lt.s32.totalorder %s45_s3, %s45_s3 }
  0x95   :  { %p1610_p9 = scmp.ne.s32.totalorder %s45_s3, %s1609_s6  ;;  %p1615_p11 = scmp.lt.s32.totalorder %s1609_s6, %s1609_s6 }
  0x97   :  { %p1616_p12 = por %p1615_p11, %p1614_p10 }
  0x99   :  { %p1617_p13 = pnand %p1616_p12, %p1610_p9 }
  0x9b   :  { %1620 = shalt.err (!%p1617_p13)
}
  0x9c   :  { %47 = dma.hbm_to_vmem [thread:$0]  %s2406_s13, 128, %s45_s3, [#allocation11]  }
  0x9d   :  { %s1800_s8 = smov [#allocation15]   ;;  %s1801_s7 = smov [#allocation18]  }
  0x9e   :  { %s65_s4 = sshll.u32 %s1800_s8, 4  ;;  %s94_s25 = sshll.u32 %s1801_s7, 4  ;;  %s66_s4 = int_to_ptr.vmem [resolvable:$true] %s65_s4  ;;  %s95_s25 = int_to_ptr.vmem [resolvable:$true] %s94_s25 }
  0x9f   :  { %s2407_s22 = sld [smem:[#allocation42_spill]] }
  0xa5   :  { %s1621_s0 = scalar_lea.hbm %s2407_s22, 256 }
  0xa6   :  { %p1622_p0 = scmp.ne.s32.totalorder %s2407_s22, %s1621_s0  ;;  %p1625_p1 = scmp.lt.u32.totalorder %s1621_s0, %s2407_s22 }
  0xa8   :  { %p1627_p2 = pnand %p1625_p1, %p1622_p0 }
  0xaa   :  { %1630 = shalt.err (!%p1627_p2)
}
  0xab   :  { %s1631_s3 = scalar_lea.vmem %s66_s4, 256  ;;  %p1636_p4 = scmp.lt.s32.totalorder %s66_s4, %s66_s4 }
  0xac   :  { %p1632_p3 = scmp.ne.s32.totalorder %s66_s4, %s1631_s3  ;;  %p1637_p5 = scmp.lt.s32.totalorder %s1631_s3, %s1631_s3 }
  0xae   :  { %p1638_p6 = por %p1637_p5, %p1636_p4 }
  0xb0   :  { %p1639_p7 = pnand %p1638_p6, %p1632_p3 }
  0xb2   :  { %1642 = shalt.err (!%p1639_p7)
}
  0xb3   :  { %71 = dma.hbm_to_vmem [thread:$0]  %s2407_s22, 256, %s66_s4, [#allocation14], %s1792_s28, %s1792_s28, %s1793_s9  }
  0xb4   :  { %s2408_s20 = sld [smem:[#allocation46_spill]] }
  0xba   :  { %s1643_s26 = scalar_lea.hbm %s2408_s20, 16 }
  0xbb   :  { %p1644_p8 = scmp.ne.s32.totalorder %s2408_s20, %s1643_s26  ;;  %p1647_p9 = scmp.lt.u32.totalorder %s1643_s26, %s2408_s20 }
  0xbd   :  { %p1649_p10 = pnand %p1647_p9, %p1644_p8 }
  0xbf   :  { %1652 = shalt.err (!%p1649_p10)
}
  0xc0   :  { %s1653_s0 = scalar_lea.vmem %s95_s25, 16  ;;  %s1657_s29 = scalar_lea.vmem %s95_s25, 32 }
  0xc1   :  { %p1654_p11 = scmp.ne.s32.totalorder %s95_s25, %s1653_s0  ;;  %p1658_p12 = scmp.lt.s32.totalorder %s95_s25, %s95_s25 }
  0xc2   :  { %p1659_p13 = scmp.lt.s32.totalorder %s1657_s29, %s1653_s0 }
  0xc4   :  { %p1660_p0 = por %p1659_p13, %p1658_p12 }
  0xc6   :  { %p1661_p1 = pnand %p1660_p0, %p1654_p11 }
  0xc8   :  { %1664 = shalt.err (!%p1661_p1)
}
  0xc9   :  { %97 = dma.hbm_to_vmem [thread:$0]  %s2408_s20, 16, %s95_s25, [#allocation17]  }
  0xca   :  { %s1802_s2 = smov [#allocation21]   ;;  %s1803_s1 = smov [#allocation24]  }
  0xcb   :  { %s115_s30 = sshll.u32 %s1802_s2, 4  ;;  %s147_s3 = sshll.u32 %s1803_s1, 4  ;;  %s116_s30 = int_to_ptr.vmem [resolvable:$true] %s115_s30  ;;  %s148_s3 = int_to_ptr.vmem [resolvable:$true] %s147_s3 }
  0xcc   :  { %s2409_s27 = sld [smem:[#allocation48_spill]] }
  0xd2   :  { %s1665_s6 = scalar_lea.hbm %s2409_s27, 512 }
  0xd3   :  { %p1666_p2 = scmp.ne.s32.totalorder %s2409_s27, %s1665_s6  ;;  %p1669_p3 = scmp.lt.u32.totalorder %s1665_s6, %s2409_s27 }
  0xd5   :  { %p1671_p4 = pnand %p1669_p3, %p1666_p2 }
  0xd7   :  { %1674 = shalt.err (!%p1671_p4)
}
  0xd8   :  { %s1675_s25 = scalar_lea.vmem %s116_s30, 512  ;;  %p1680_p6 = scmp.lt.s32.totalorder %s116_s30, %s116_s30 }
  0xd9   :  { %p1676_p5 = scmp.ne.s32.totalorder %s116_s30, %s1675_s25  ;;  %p1681_p7 = scmp.lt.s32.totalorder %s1675_s25, %s1675_s25 }
  0xdb   :  { %p1682_p8 = por %p1681_p7, %p1680_p6 }
  0xdd   :  { %p1683_p9 = pnand %p1682_p8, %p1676_p5 }
  0xdf   :  { %1686 = shalt.err (!%p1683_p9)
}
  0xe0   :  { %121 = dma.hbm_to_vmem [thread:$0]  %s2409_s27, 512, %s116_s30, [#allocation20], %s1792_s28, %s1792_s28, %s1793_s9  }
  0xe1   :  { %s1687_s4 = scalar_lea.hbm %s2369_s14, 512 }
  0xe2   :  { %p1688_p10 = scmp.ne.s32.totalorder %s2369_s14, %s1687_s4  ;;  %p1691_p11 = scmp.lt.u32.totalorder %s1687_s4, %s2369_s14 }
  0xe4   :  { %p1693_p12 = pnand %p1691_p11, %p1688_p10 }
  0xe6   :  { %1696 = shalt.err (!%p1693_p12)
}
  0xe7   :  { %s1697_s24 = scalar_lea.vmem %s148_s3, 512  ;;  %p1702_p0 = scmp.lt.s32.totalorder %s148_s3, %s148_s3 }
  0xe8   :  { %p1698_p13 = scmp.ne.s32.totalorder %s148_s3, %s1697_s24  ;;  %p1703_p1 = scmp.lt.s32.totalorder %s1697_s24, %s1697_s24 }
  0xea   :  { %p1704_p2 = por %p1703_p1, %p1702_p0 }
  0xec   :  { %p1705_p3 = pnand %p1704_p2, %p1698_p13 }
  0xee   :  { %1708 = shalt.err (!%p1705_p3)
}
  0xef   :  { %153 = dma.hbm_to_vmem [thread:$0]  %s2369_s14, 512, %s148_s3, [#allocation23], %s1792_s28, %s1792_s28, %s1793_s9  }
  0xf0   :  { %s1804_s6 = smov [#allocation27]   ;;  %s1805_s8 = smov [#allocation30]  }
  0xf1   :  { %s177_s26 = sshll.u32 %s1804_s6, 4  ;;  %s201_s7 = sshll.u32 %s1805_s8, 4  ;;  %s178_s26 = int_to_ptr.vmem [resolvable:$true] %s177_s26  ;;  %s202_s7 = int_to_ptr.vmem [resolvable:$true] %s201_s7 }
  0xf2   :  { %s1709_s20 = scalar_lea.hbm %s2374_s19, 2048 }
  0xf3   :  { %p1710_p4 = scmp.ne.s32.totalorder %s2374_s19, %s1709_s20  ;;  %p1713_p5 = scmp.lt.u32.totalorder %s1709_s20, %s2374_s19 }
  0xf5   :  { %p1715_p6 = pnand %p1713_p5, %p1710_p4 }
  0xf7   :  { %1718 = shalt.err (!%p1715_p6)
}
  0xf8   :  { %s1719_s14 = scalar_lea.vmem %s178_s26, 2048  ;;  %p1724_p8 = scmp.lt.s32.totalorder %s178_s26, %s178_s26 }
  0xf9   :  { %p1720_p7 = scmp.ne.s32.totalorder %s178_s26, %s1719_s14  ;;  %p1725_p9 = scmp.lt.s32.totalorder %s1719_s14, %s1719_s14 }
  0xfb   :  { %p1726_p10 = por %p1725_p9, %p1724_p8 }
  0xfd   :  { %p1727_p11 = pnand %p1726_p10, %p1720_p7 }
  0xff   :  { %1730 = shalt.err (!%p1727_p11)
}
 0x100   :  { %183 = dma.hbm_to_vmem [thread:$0]  %s2374_s19, 2048, %s178_s26, [#allocation26], %s1792_s28, %s1792_s28, %s1793_s9  }
 0x101   :  { %s1731_s13 = scalar_lea.hbm %s2376_s21, 2048 }
 0x102   :  { %p1732_p12 = scmp.ne.s32.totalorder %s2376_s21, %s1731_s13  ;;  %p1735_p13 = scmp.lt.u32.totalorder %s1731_s13, %s2376_s21 }
 0x104   :  { %p1737_p0 = pnand %p1735_p13, %p1732_p12 }
 0x106   :  { %1740 = shalt.err (!%p1737_p0)
}
 0x107   :  { %s1741_s8 = scalar_lea.vmem %s202_s7, 2048  ;;  %p1746_p2 = scmp.lt.s32.totalorder %s202_s7, %s202_s7 }
 0x108   :  { %p1742_p1 = scmp.ne.s32.totalorder %s202_s7, %s1741_s8  ;;  %p1747_p3 = scmp.lt.s32.totalorder %s1741_s8, %s1741_s8 }
 0x10a   :  { %p1748_p4 = por %p1747_p3, %p1746_p2 }
 0x10c   :  { %p1749_p5 = pnand %p1748_p4, %p1742_p1 }
 0x10e   :  { %1752 = shalt.err (!%p1749_p5)
}
 0x10f   :  { %207 = dma.hbm_to_vmem [thread:$0]  %s2376_s21, 2048, %s202_s7, [#allocation29], %s1792_s28, %s1792_s28, %s1793_s9  }
 0x110   :  { %1775 = dma.done.wait [#allocation11], 128  }
 0x111   :  { %1776 = vsyncadd [#allocation11], 4294967168 }
 0x112   :  { %1777 = dma.done.wait [#allocation14], 512  }
 0x113   :  { %1778 = vsyncadd [#allocation14], 4294966784 }
 0x114   :  { %1779 = dma.done.wait [#allocation17], 272  }
 0x115   :  { %1780 = vsyncadd [#allocation17], 4294967024 }
 0x116   :  { %1781 = dma.done.wait [#allocation20], 1024  }
 0x117   :  { %1782 = vsyncadd [#allocation20], 4294966272 }
 0x118   :  { %1783 = dma.done.wait [#allocation23], 1024  }
 0x119   :  { %1784 = vsyncadd [#allocation23], 4294966272 }
 0x11a   :  { %1785 = dma.done.wait [#allocation26], 2560  }
 0x11b   :  { %1786 = vsyncadd [#allocation26], 4294964736 }
 0x11c   :  { %1787 = dma.done.wait [#allocation29], 4096  }
 0x11d   :  { %1788 = vsyncadd [#allocation29], 4294963200  ;;  %v1806_v0 = vmov 0.0|0.0   ;;  %vm1807_vm0 = vmmov 0   ;;  %v1808_v1 = vmov 0.0   ;;  %v261_v2 = vld [vmem:[#allocation15] sm:$0xff] }
 0x11e   :  { %1277 = vmatprep.subr.bf16.mxu0 %v1806_v0  ;;  %1217 = vmatprep.mubr.msk.f32.mxu0 %vm1807_vm0, %v1808_v1  ;;  %v262_v3 = vld [vmem:[#allocation15 + $0x8] sm:$0xff]  ;;  %v263_v4 = vmul.f32 1.442695, %v261_v2  ;;  %s2410_s9 = sld [smem:[#allocation45_spill]]  ;;  %v259_v28 = vld [vmem:[#allocation16] sm:$0xff]  ;;  %v260_v32 = vld [vmem:[#allocation16 + $0x8] sm:$0xff] }
 0x11f   :  { %1292 = vmatprep.subr.bf16.mxu1 %v1806_v0  ;;  %1274 = vmatprep.mubr.msk.f32.mxu1 %vm1807_vm0, %v1808_v1  ;;  %v265_v5 = vmul.f32 1.442695, %v262_v3  ;;  %v257_v34 = vld [vmem:[#allocation13] sm:$0xff]  ;;  %v293_v36 = vld [vmem:[#allocation18] sm:$0x1]  ;;  %v258_v38 = vld [vmem:[#allocation13 + $0x8] sm:$0xff] }
 0x120   :  { %1335 = vpow2.f32 %v263_v4  ;;  %vm289_vm4 = vcmask 261120   ;;  %s2413_s25 = sld [smem:[#allocation44_spill]]  ;;  %vm308_vm5 = vcmask 253952   ;;  %v769_v51 = vld [vmem:[#allocation10] sm:$0xff]  ;;  %vm779_vm6 = vcmask 130048   ;;  %v320_v56 = vld [vmem:[#allocation21 + $0x10] sm:$0xff] }
 0x121   :  { %1337 = vpow2.f32 %v265_v5  ;;  %v318_v52 = vld [vmem:[#allocation21] sm:$0xff]  ;;  %v319_v53 = vld [vmem:[#allocation21 + $0x8] sm:$0xff]  ;;  %v321_v57 = vld [vmem:[#allocation21 + $0x18] sm:$0xff]  ;;  %v326_v58 = vmul.f32 1.442695, %v320_v56  ;;  %s2414_s0 = sld [smem:[#allocation49_spill]] }
 0x122   :  { %v322_v54 = vmul.f32 1.442695, %v318_v52  ;;  %v324_v55 = vmul.f32 1.442695, %v319_v53  ;;  %v328_v59 = vmul.f32 1.442695, %v321_v57 }
 0x123   :  { %v380_v56 = vld [vmem:[%s2366_s11] sm:$0x1]  ;;  %s2439_s21 = sld [smem:[#allocation51_spill]]  ;;  %s2440_s7 = sld [smem:[#allocation50_spill]] }
 0x124   :  { %v294_v6 = vld [vmem:[%s2410_s9] sm:$0x1]  ;;  %v381_v57 = vmul.f32 1.442695, %v380_v56  ;;  %s1809_s15 = smov [#allocation31]  }
 0x125   :  { %v295_v7 = vmul.f32 1.442695, %v294_v6 }
 0x126   :  { %v292_v42 = vld [vmem:[%s2413_s25] sm:$0x1]  ;;  %s1161_s25 = sshll.u32 %s1809_s15, 4  ;;  %s1162_s25 = int_to_ptr.vmem [resolvable:$true] %s1161_s25 }
 0x127   :  { %1339 = vpow2.f32 %v295_v7  ;;  %s1753_s20 = scalar_lea.vmem %s1162_s25, 128  ;;  %p1758_p7 = scmp.lt.s32.totalorder %s1162_s25, %s1162_s25 }
 0x128   :  { %p1754_p6 = scmp.ne.s32.totalorder %s1162_s25, %s1753_s20  ;;  %p1759_p8 = scmp.lt.s32.totalorder %s1753_s20, %s1753_s20 }
 0x12a   :  { %v1336_v8 = vpop.eup %1335  ;;  %p1760_p9 = por %p1759_p8, %p1758_p7 }
 0x12b   :  { %v1338_v9 = vpop.eup %1337  ;;  %v267_v10 = vadd.f32 1.0, %v1336_v8  ;;  %v270_v14 = vmul.f32 -0.5, %v1336_v8  ;;  %v273_v18 = vand.u32 2147483647, %v1336_v8 }
 0x12c   :  { %v276_v12 = vadd.f32 1.0, %v1338_v9  ;;  %v279_v15 = vmul.f32 -0.5, %v1338_v9  ;;  %v282_v20 = vand.u32 2147483647, %v1338_v9  ;;  %p1761_p10 = pnand %p1760_p9, %p1754_p6 }
 0x12d   :  { %1341 = vlog2.f32 %v267_v10  ;;  %v271_v17 = vadd.f32 1.0, %v270_v14  ;;  %vm2138_vm1 = vcmp.lt.f32.partialorder %v273_v18, 0.0004427343 }
 0x12e   :  { %1343 = vlog2.f32 %v276_v12  ;;  %v280_v19 = vadd.f32 1.0, %v279_v15  ;;  %vm283_vm2 = vcmp.lt.f32.partialorder %v282_v20, 0.0004427343  ;;  %v315_v20 = vld [vmem:[%s2414_s0 + $0x8] sm:$0xff] }
 0x12f   :  { %v272_v23 = vmul.f32 %v1336_v8, %v271_v17 }
 0x130   :  { %v281_v26 = vmul.f32 %v1338_v9, %v280_v19  ;;  %v314_v19 = vld [vmem:[%s2414_s0] sm:$0xff] }
 0x131   :  { %v1340_v11 = vpop.eup %1339 }
 0x132   :  { %v297_v13 = vadd.f32 1.0, %v1340_v11  ;;  %v300_v16 = vmul.f32 -0.5, %v1340_v11  ;;  %v303_v22 = vand.u32 2147483647, %v1340_v11 }
 0x134   :  { %1345 = vlog2.f32 %v297_v13  ;;  %v301_v21 = vadd.f32 1.0, %v300_v16  ;;  %vm304_vm3 = vcmp.lt.f32.partialorder %v303_v22, 0.0004427343 }
 0x135   :  { %1347 = vpow2.f32 %v322_v54 }
 0x136   :  { %v302_v30 = vmul.f32 %v1340_v11, %v301_v21  ;;  %1349 = vpow2.f32 %v324_v55 }
 0x137   :  { %v1342_v24 = vpop.eup %1341  ;;  %1351 = vpow2.f32 %v326_v58 }
 0x138   :  { %v1344_v27 = vpop.eup %1343  ;;  %v269_v29 = vmul.f32 0.6931472, %v1342_v24  ;;  %1353 = vpow2.f32 %v328_v59 }
 0x139   :  { %v278_v33 = vmul.f32 0.6931472, %v1344_v27 }
 0x13a   :  { %v275_v35 = vsel %vm2138_vm1, %v272_v23, %v269_v29 }
 0x13b   :  { %v284_v39 = vsel %vm283_vm2, %v281_v26, %v278_v33  ;;  %v285_v40 = vmul.f32 %v275_v35, %v259_v28 }
 0x13c   :  { %v286_v41 = vmul.f32 %v284_v39, %v260_v32  ;;  %v316_v39 = vld [vmem:[%s2414_s0 + $0x10] sm:$0xff] }
 0x13d   :  { %v287_v44 = vadd.f32 %v285_v40, %v257_v34  ;;  %v317_v40 = vld [vmem:[%s2414_s0 + $0x18] sm:$0xff] }
 0x13e   :  { %v1346_v31 = vpop.eup %1345  ;;  %v288_v46 = vadd.f32 %v286_v41, %v258_v38 }
 0x13f   :  { %v299_v37 = vmul.f32 0.6931472, %v1346_v31  ;;  %290 = vst.msk [vmem:[#allocation2] sm:$0xff] %vm289_vm4, %v287_v44  ;;  %v1348_v60 = vpop.eup %1347  ;;  %v311_v31 = vld [vmem:[#allocation19 + $0x8] sm:$0xff]  ;;  %v312_v44 = vld [vmem:[#allocation19 + $0x10] sm:$0xff] }
 0x140   :  { %291 = vst.msk [vmem:[#allocation2 + $0x8] sm:$0xff] %vm289_vm4, %v288_v46  ;;  %v1350_v61 = vpop.eup %1349  ;;  %v330_v62 = vadd.f32 1.0, %v1348_v60  ;;  %v333_v6 = vmul.f32 -0.5, %v1348_v60  ;;  %v336_v11 = vand.u32 2147483647, %v1348_v60 }
 0x141   :  { %v305_v43 = vsel %vm304_vm3, %v302_v30, %v299_v37  ;;  %v339_v63 = vadd.f32 1.0, %v1350_v61  ;;  %v1352_v2 = vpop.eup %1351  ;;  %v342_v7 = vmul.f32 -0.5, %v1350_v61  ;;  %v345_v12 = vand.u32 2147483647, %v1350_v61  ;;  %v310_v30 = vld [vmem:[#allocation19] sm:$0xff] }
 0x142   :  { %v306_v45 = vmul.f32 %v305_v43, %v293_v36  ;;  %1355 = vlog2.f32 %v330_v62  ;;  %v1354_v3 = vpop.eup %1353  ;;  %v348_v4 = vadd.f32 1.0, %v1352_v2  ;;  %v334_v8 = vadd.f32 1.0, %v333_v6 }
 0x143   :  { %1357 = vlog2.f32 %v339_v63  ;;  %v357_v5 = vadd.f32 1.0, %v1354_v3  ;;  %v343_v9 = vadd.f32 1.0, %v342_v7  ;;  %v351_v17 = vmul.f32 -0.5, %v1352_v2 }
 0x144   :  { %v307_v47 = vadd.f32 %v306_v45, %v292_v42  ;;  %1359 = vlog2.f32 %v348_v4  ;;  %v335_v15 = vmul.f32 %v1348_v60, %v334_v8  ;;  %vm337_vm7 = vcmp.lt.f32.partialorder %v336_v11, 0.0004427343  ;;  %v313_v45 = vld [vmem:[#allocation19 + $0x18] sm:$0xff] }
 0x145   :  { %1361 = vlog2.f32 %v357_v5  ;;  %v344_v16 = vmul.f32 %v1350_v61, %v343_v9  ;;  %vm346_vm8 = vcmp.lt.f32.partialorder %v345_v12, 0.0004427343  ;;  %v352_v22 = vadd.f32 1.0, %v351_v17  ;;  %v378_v5 = vld [vmem:[%s2365_s10] sm:$0x1] }
 0x146   :  { %309 = vst.msk [vmem:[#allocation3] sm:$0x1] %vm308_vm5, %v307_v47  ;;  %v770_v48 = vld [vmem:[#allocation2] sm:$0xff]  ;;  %v360_v23 = vmul.f32 -0.5, %v1354_v3  ;;  %v354_v27 = vand.u32 2147483647, %v1352_v2  ;;  %1363 = vpow2.f32 %v381_v57 }
 0x147   :  { %v771_v49 = vld [vmem:[#allocation2 + $0x8] sm:$0xff]  ;;  %v363_v28 = vand.u32 2147483647, %v1354_v3  ;;  %v353_v34 = vmul.f32 %v1352_v2, %v352_v22 }
 0x148   :  { %v1278_v50 = vpack.c.bf16 %v771_v49, %v770_v48  ;;  %v361_v35 = vadd.f32 1.0, %v360_v23  ;;  %vm355_vm9 = vcmp.lt.f32.partialorder %v354_v27, 0.0004427343 }
 0x149   :  { %vm364_vm10 = vcmp.lt.f32.partialorder %v363_v28, 0.0004427343  ;;  %v405_v28 = vld [vmem:[#allocation24 + $0x10] sm:$0xff] }
 0x14a   :  { %1279 = vmatpush3.bf16.msra.mxu0 %v1278_v50  ;;  %v362_v42 = vmul.f32 %v1354_v3, %v361_v35  ;;  %v379_v3 = vld [vmem:[%s2367_s12] sm:$0x1] }
 0x14b   :  { %1280 = vmatprep.subr.bf16.mxu0 %v1806_v0 }
 0x14c   :  { %v1356_v10 = vpop.eup %1355 }
 0x14d   :  { %1218 = vmatmul.mubr.msk.f32.vlgmr.msra.gmra.mrb[0].mxu0 %vm779_vm6, %v769_v51  ;;  %v1358_v13 = vpop.eup %1357  ;;  %v332_v14 = vmul.f32 0.6931472, %v1356_v10  ;;  %v1176_v9 = vld [vmem:[#allocation3] ss:$0 sm:$0xff] }
 0x14e   :  { %1228 = vmatprep.mubr.msk.f32.mxu0 %vm1807_vm0, %v1808_v1  ;;  %v341_v18 = vmul.f32 0.6931472, %v1358_v13  ;;  %v1360_v24 = vpop.eup %1359 }
 0x14f   :  { %v338_v21 = vsel %vm337_vm7, %v335_v15, %v332_v14  ;;  %v1362_v29 = vpop.eup %1361  ;;  %v350_v33 = vmul.f32 0.6931472, %v1360_v24  ;;  %v403_v24 = vld [vmem:[#allocation24] sm:$0xff] }
 0x150   :  { %v347_v25 = vsel %vm346_vm8, %v344_v16, %v341_v18  ;;  %v366_v26 = vmul.f32 %v338_v21, %v314_v19  ;;  %v359_v37 = vmul.f32 0.6931472, %v1362_v29  ;;  %v1364_v58 = vpop.eup %1363  ;;  %v406_v29 = vld [vmem:[#allocation24 + $0x18] sm:$0xff] }
 0x151   :  { %v367_v32 = vmul.f32 %v347_v25, %v315_v20  ;;  %v356_v41 = vsel %vm355_vm9, %v353_v34, %v350_v33  ;;  %v383_v59 = vadd.f32 1.0, %v1364_v58  ;;  %v386_v60 = vmul.f32 -0.5, %v1364_v58  ;;  %v404_v25 = vld [vmem:[#allocation24 + $0x8] sm:$0xff] }
 0x152   :  { %v370_v36 = vadd.f32 %v366_v26, %v310_v30  ;;  %v368_v43 = vmul.f32 %v356_v41, %v316_v39  ;;  %v365_v46 = vsel %vm364_vm10, %v362_v42, %v359_v37  ;;  %v389_v62 = vand.u32 2147483647, %v1364_v58 }
 0x153   :  { %v371_v38 = vadd.f32 %v367_v32, %v311_v31  ;;  %v369_v47 = vmul.f32 %v365_v46, %v317_v40  ;;  %1365 = vlog2.f32 %v383_v59  ;;  %v387_v61 = vadd.f32 1.0, %v386_v60 }
 0x154   :  { %374 = vst.msk [vmem:[#allocation4] sm:$0xff] %vm289_vm4, %v370_v36  ;;  %v372_v48 = vadd.f32 %v368_v43, %v312_v44  ;;  %vm390_vm11 = vcmp.lt.f32.partialorder %v389_v62, 0.0004427343  ;;  %v407_v26 = vmul.f32 1.442695, %v403_v24 }
 0x155   :  { %375 = vst.msk [vmem:[#allocation4 + $0x8] sm:$0xff] %vm289_vm4, %v371_v38  ;;  %v373_v49 = vadd.f32 %v369_v47, %v313_v45  ;;  %v388_v63 = vmul.f32 %v1364_v58, %v387_v61  ;;  %v409_v27 = vmul.f32 1.442695, %v404_v25  ;;  %v411_v30 = vmul.f32 1.442695, %v405_v28 }
 0x156   :  { %376 = vst.msk [vmem:[#allocation4 + $0x10] sm:$0xff] %vm289_vm4, %v372_v48  ;;  %v413_v31 = vmul.f32 1.442695, %v406_v29 }
 0x157   :  { %377 = vst.msk [vmem:[#allocation4 + $0x18] sm:$0xff] %vm289_vm4, %v373_v49 }
 0x15b   :  { %v866_v50 = vld [vmem:[#allocation4] sm:$0xff] }
 0x15c   :  { %v867_v51 = vld [vmem:[#allocation4 + $0x8] sm:$0xff] }
 0x15d   :  { %v1281_v52 = vpack.c.bf16 %v867_v51, %v866_v50  ;;  %v868_v53 = vld [vmem:[#allocation4 + $0x10] sm:$0xff]  ;;  %v1366_v2 = vpop.eup %1365 }
 0x15e   :  { %v869_v54 = vld [vmem:[#allocation4 + $0x18] sm:$0xff]  ;;  %v385_v4 = vmul.f32 0.6931472, %v1366_v2  ;;  %v396_v2 = vld [vmem:[#allocation22 + $0x8] sm:$0xff] }
 0x15f   :  { %1282 = vmatpush3.bf16.msra.mxu0 %v1281_v52  ;;  %v1284_v55 = vpack.c.bf16 %v869_v54, %v868_v53  ;;  %v399_v52 = vld [vmem:[#allocation25] sm:$0xff]  ;;  %v400_v53 = vld [vmem:[#allocation25 + $0x8] sm:$0xff] }
 0x160   :  { %1283 = vmatprep.subr.bf16.mxu0 %v1806_v0  ;;  %v391_v6 = vsel %vm390_vm11, %v388_v63, %v385_v4  ;;  %v395_v63 = vld [vmem:[#allocation22] sm:$0xff] }
 0x161   :  { %v392_v7 = vmul.f32 %v391_v6, %v379_v3 }
 0x163   :  { %1285 = vmatpush3.bf16.msra.mxu0 %v1284_v55  ;;  %v393_v8 = vadd.f32 %v392_v7, %v378_v5 }
 0x164   :  { %1286 = vmatprep.subr.bf16.mxu0 %v1806_v0 }
 0x165   :  { %394 = vst.msk [vmem:[#allocation5] sm:$0x1] %vm308_vm5, %v393_v8 }
 0x220   :  { %v849_v10 = vpop.f32.mrb[0].mxu0 }
 0x221   :  { %v850_v11 = vadd.f32 %v1176_v9, %v849_v10  ;;  %v1219_v12 = vpop.f32.mrb[1].mxu0  ;;  %v401_v10 = vld [vmem:[#allocation25 + $0x10] sm:$0xff] }
 0x223   :  { %v854_v13 = vmul.f32 1.442695, %v850_v11  ;;  %vm853_vm13 = vcmp.gt.f32.partialorder %v850_v11, 20.0 }
 0x225   :  { %1367 = vpow2.f32 %v854_v13 }
 0x22f   :  { %v1368_v14 = vpop.eup %1367 }
 0x230   :  { %v856_v15 = vadd.f32 1.0, %v1368_v14  ;;  %v859_v16 = vmul.f32 -0.5, %v1368_v14  ;;  %v862_v18 = vand.u32 2147483647, %v1368_v14 }
 0x232   :  { %1369 = vlog2.f32 %v856_v15  ;;  %v860_v17 = vadd.f32 1.0, %v859_v16  ;;  %vm863_vm12 = vcmp.lt.f32.partialorder %v862_v18, 0.0004427343  ;;  %v397_v16 = vld [vmem:[#allocation22 + $0x10] sm:$0xff] }
 0x233   :  { %1371 = vpow2.f32 %v407_v26 }
 0x234   :  { %v861_v21 = vmul.f32 %v1368_v14, %v860_v17  ;;  %1373 = vpow2.f32 %v409_v27  ;;  %v398_v17 = vld [vmem:[#allocation22 + $0x18] sm:$0xff] }
 0x235   :  { %1375 = vpow2.f32 %v411_v30 }
 0x236   :  { %1377 = vpow2.f32 %v413_v31 }
 0x23c   :  { %v1370_v19 = vpop.eup %1369 }
 0x23d   :  { %v858_v20 = vmul.f32 0.6931472, %v1370_v19  ;;  %v1372_v32 = vpop.eup %1371 }
 0x23e   :  { %v1374_v33 = vpop.eup %1373  ;;  %v415_v34 = vadd.f32 1.0, %v1372_v32  ;;  %v418_v39 = vmul.f32 -0.5, %v1372_v32  ;;  %v421_v44 = vand.u32 2147483647, %v1372_v32 }
 0x23f   :  { %v864_v22 = vsel %vm863_vm12, %v861_v21, %v858_v20  ;;  %v424_v35 = vadd.f32 1.0, %v1374_v33  ;;  %v1376_v36 = vpop.eup %1375  ;;  %v427_v40 = vmul.f32 -0.5, %v1374_v33  ;;  %v430_v45 = vand.u32 2147483647, %v1374_v33 }
 0x240   :  { %v865_v23 = vsel %vm853_vm13, %v850_v11, %v864_v22  ;;  %1379 = vlog2.f32 %v415_v34  ;;  %v433_v37 = vadd.f32 1.0, %v1376_v36  ;;  %v419_v41 = vadd.f32 1.0, %v418_v39  ;;  %v402_v11 = vld [vmem:[#allocation25 + $0x18] sm:$0xff]  ;;  %v463_v34 = vld [vmem:[%s2371_s16] sm:$0x1] }
 0x241   :  { %1229 = vmatmul.mubr.msk.f32.vlgmr.msra.gmra.mrb[2].mxu0 %vm289_vm4, %v865_v23  ;;  %1381 = vlog2.f32 %v424_v35  ;;  %v428_v42 = vadd.f32 1.0, %v427_v40  ;;  %v436_v50 = vmul.f32 -0.5, %v1376_v36  ;;  %vm422_vm14 = vcmp.lt.f32.partialorder %v421_v44, 0.0004427343  ;;  %v465_v23 = vld [vmem:[%s2372_s17] sm:$0x1] }
 0x242   :  { %1239 = vmatprep.mubr.msk.f32.mxu0 %vm1807_vm0, %v1808_v1  ;;  %v1378_v1 = vpop.eup %1377  ;;  %1383 = vlog2.f32 %v433_v37  ;;  %v420_v48 = vmul.f32 %v1372_v32, %v419_v41  ;;  %vm431_vm15 = vcmp.lt.f32.partialorder %v430_v45, 0.0004427343  ;;  %v439_v60 = vand.u32 2147483647, %v1376_v36  ;;  %v464_v32 = vld [vmem:[%s2373_s18] sm:$0x1] }
 0x243   :  { %v442_v38 = vadd.f32 1.0, %v1378_v1  ;;  %v429_v49 = vmul.f32 %v1374_v33, %v428_v42  ;;  %v437_v55 = vadd.f32 1.0, %v436_v50  ;;  %v445_v56 = vmul.f32 -0.5, %v1378_v1  ;;  %v1178_v37 = vld [vmem:[#allocation5] ss:$0 sm:$0xff] }
 0x244   :  { %v448_v61 = vand.u32 2147483647, %v1378_v1  ;;  %vm440_vm0 = vcmp.lt.f32.partialorder %v439_v60, 0.0004427343  ;;  %v466_v24 = vmul.f32 1.442695, %v465_v23 }
 0x245   :  { %1385 = vlog2.f32 %v442_v38  ;;  %v438_v5 = vmul.f32 %v1376_v36, %v437_v55  ;;  %v446_v6 = vadd.f32 1.0, %v445_v56  ;;  %v514_v56 = vld [vmem:[#allocation28 + $0x10] sm:$0xff]  ;;  %v516_v60 = vld [vmem:[#allocation28 + $0x20] sm:$0xff] }
 0x246   :  { %vm449_vm1 = vcmp.lt.f32.partialorder %v448_v61, 0.0004427343  ;;  %1387 = vpow2.f32 %v466_v24  ;;  %v517_v61 = vld [vmem:[#allocation28 + $0x28] sm:$0xff] }
 0x247   :  { %v447_v13 = vmul.f32 %v1378_v1, %v446_v6 }
 0x24a   :  { %v1380_v43 = vpop.eup %1379 }
 0x24b   :  { %v1382_v46 = vpop.eup %1381  ;;  %v417_v47 = vmul.f32 0.6931472, %v1380_v43 }
 0x24c   :  { %v426_v51 = vmul.f32 0.6931472, %v1382_v46  ;;  %v1384_v57 = vpop.eup %1383 }
 0x24d   :  { %v423_v54 = vsel %vm422_vm14, %v420_v48, %v417_v47  ;;  %v435_v4 = vmul.f32 0.6931472, %v1384_v57  ;;  %v515_v57 = vld [vmem:[#allocation28 + $0x18] sm:$0xff] }
 0x24e   :  { %v432_v58 = vsel %vm431_vm15, %v429_v49, %v426_v51  ;;  %v451_v59 = vmul.f32 %v423_v54, %v399_v52  ;;  %v512_v52 = vld [vmem:[#allocation28] sm:$0xff] }
 0x24f   :  { %v1386_v62 = vpop.eup %1385  ;;  %v452_v3 = vmul.f32 %v432_v58, %v400_v53  ;;  %v441_v12 = vsel %vm440_vm0, %v438_v5, %v435_v4  ;;  %v513_v53 = vld [vmem:[#allocation28 + $0x8] sm:$0xff]  ;;  %v528_v54 = vmul.f32 1.442695, %v512_v52  ;;  %v532_v58 = vmul.f32 1.442695, %v514_v56 }
 0x250   :  { %v455_v7 = vadd.f32 %v451_v59, %v395_v63  ;;  %v444_v8 = vmul.f32 0.6931472, %v1386_v62  ;;  %v453_v14 = vmul.f32 %v441_v12, %v401_v10  ;;  %v1388_v25 = vpop.eup %1387  ;;  %v530_v55 = vmul.f32 1.442695, %v513_v53  ;;  %v520_v10 = vld [vmem:[#allocation28 + $0x40] sm:$0xff]  ;;  %v481_v56 = vld [vmem:[#allocation27 + $0x8] sm:$0xff] }
 0x251   :  { %v456_v9 = vadd.f32 %v452_v3, %v396_v2  ;;  %v468_v26 = vadd.f32 1.0, %v1388_v25  ;;  %v471_v27 = vmul.f32 -0.5, %v1388_v25  ;;  %v474_v29 = vand.u32 2147483647, %v1388_v25  ;;  %v518_v2 = vld [vmem:[#allocation28 + $0x30] sm:$0xff]  ;;  %v519_v3 = vld [vmem:[#allocation28 + $0x38] sm:$0xff] }
 0x252   :  { %v450_v18 = vsel %vm449_vm1, %v447_v13, %v444_v8  ;;  %v457_v20 = vadd.f32 %v453_v14, %v397_v16  ;;  %v534_v59 = vmul.f32 1.442695, %v515_v57  ;;  %v536_v62 = vmul.f32 1.442695, %v516_v60 }
 0x253   :  { %v1287_v15 = vpack.c.bf16 %v456_v9, %v455_v7  ;;  %v454_v19 = vmul.f32 %v450_v18, %v402_v11  ;;  %1389 = vlog2.f32 %v468_v26  ;;  %v472_v28 = vadd.f32 1.0, %v471_v27  ;;  %v521_v11 = vld [vmem:[#allocation28 + $0x48] sm:$0xff]  ;;  %v522_v18 = vld [vmem:[#allocation28 + $0x50] sm:$0xff] }
 0x254   :  { %vm475_vm2 = vcmp.lt.f32.partialorder %v474_v29, 0.0004427343  ;;  %v538_v63 = vmul.f32 1.442695, %v517_v61  ;;  %v540_v5 = vmul.f32 1.442695, %v518_v2 }
 0x255   :  { %1288 = vmatpush3.bf16.msra.mxu0 %v1287_v15  ;;  %v458_v21 = vadd.f32 %v454_v19, %v398_v17  ;;  %v473_v30 = vmul.f32 %v1388_v25, %v472_v28  ;;  %v542_v8 = vmul.f32 1.442695, %v519_v3  ;;  %v544_v13 = vmul.f32 1.442695, %v520_v10  ;;  %v523_v19 = vld [vmem:[#allocation28 + $0x58] sm:$0xff] }
 0x256   :  { %1289 = vmatprep.subr.bf16.mxu0 %v1806_v0  ;;  %v546_v16 = vmul.f32 1.442695, %v521_v11  ;;  %v550_v24 = vmul.f32 1.442695, %v523_v19  ;;  %v483_v19 = vld [vmem:[#allocation27 + $0x18] sm:$0xff] }
 0x257   :  { %v1290_v22 = vpack.c.bf16 %v458_v21, %v457_v20  ;;  %v548_v21 = vmul.f32 1.442695, %v522_v18  ;;  %v482_v18 = vld [vmem:[#allocation27 + $0x10] sm:$0xff] }
 0x259   :  { %1291 = vmatpush3.bf16.msra.mxu0 %v1290_v22 }
 0x25d   :  { %v1390_v31 = vpop.eup %1389 }
 0x25e   :  { %v470_v33 = vmul.f32 0.6931472, %v1390_v31 }
 0x260   :  { %v476_v35 = vsel %vm475_vm2, %v473_v30, %v470_v33 }
 0x261   :  { %v477_v36 = vmul.f32 %v476_v35, %v464_v32 }
 0x263   :  { %v478_v1 = vadd.f32 %v477_v36, %v463_v34 }
 0x265   :  { %479 = vst [vmem:[#allocation7] sm:$0x1] %v478_v1 }
 0x314   :  { %v947_v38 = vpop.f32.mrb[2].mxu0 }
 0x315   :  { %v948_v39 = vadd.f32 %v1178_v37, %v947_v38  ;;  %v1230_v40 = vpop.f32.mrb[3].mxu0 }
 0x317   :  { %v952_v41 = vmul.f32 1.442695, %v948_v39  ;;  %vm951_vm5 = vcmp.gt.f32.partialorder %v948_v39, 20.0 }
 0x319   :  { %1391 = vpow2.f32 %v952_v41 }
 0x323   :  { %v1392_v42 = vpop.eup %1391 }
 0x324   :  { %v954_v43 = vadd.f32 1.0, %v1392_v42  ;;  %v957_v44 = vmul.f32 -0.5, %v1392_v42  ;;  %v960_v46 = vand.u32 2147483647, %v1392_v42 }
 0x326   :  { %1393 = vlog2.f32 %v954_v43  ;;  %v958_v45 = vadd.f32 1.0, %v957_v44  ;;  %vm961_vm3 = vcmp.lt.f32.partialorder %v960_v46, 0.0004427343  ;;  %v496_v43 = vld [vmem:[#allocation30] sm:$0xff]  ;;  %v497_v44 = vld [vmem:[#allocation30 + $0x8] sm:$0xff] }
 0x327   :  { %1395 = vpow2.f32 %v528_v54 }
 0x328   :  { %v959_v49 = vmul.f32 %v1392_v42, %v958_v45  ;;  %1397 = vpow2.f32 %v530_v55  ;;  %v480_v55 = vld [vmem:[#allocation27] sm:$0xff] }
 0x329   :  { %1399 = vpow2.f32 %v532_v58 }
 0x32a   :  { %1401 = vpow2.f32 %v534_v59 }
 0x32b   :  { %1403 = vpow2.f32 %v536_v62 }
 0x32c   :  { %1405 = vpow2.f32 %v538_v63 }
 0x32d   :  { %1407 = vpow2.f32 %v540_v5  ;;  %v498_v5 = vld [vmem:[#allocation30 + $0x10] sm:$0xff] }
 0x330   :  { %v1394_v47 = vpop.eup %1393 }
 0x331   :  { %v956_v48 = vmul.f32 0.6931472, %v1394_v47  ;;  %v1396_v4 = vpop.eup %1395 }
 0x332   :  { %v1398_v6 = vpop.eup %1397  ;;  %v560_v7 = vadd.f32 1.0, %v1396_v4  ;;  %v563_v25 = vmul.f32 -0.5, %v1396_v4  ;;  %v566_v32 = vand.u32 2147483647, %v1396_v4 }
 0x333   :  { %v962_v50 = vsel %vm961_vm3, %v959_v49, %v956_v48  ;;  %v569_v9 = vadd.f32 1.0, %v1398_v6  ;;  %v2195_v12 = vpop.eup %1399  ;;  %v572_v26 = vmul.f32 -0.5, %v1398_v6  ;;  %v575_v33 = vand.u32 2147483647, %v1398_v6 }
 0x334   :  { %v963_v51 = vsel %vm951_vm5, %v948_v39, %v962_v50  ;;  %1409 = vlog2.f32 %v560_v7  ;;  %v2197_v14 = vpop.eup %1401  ;;  %v578_v15 = vadd.f32 1.0, %v2195_v12  ;;  %v564_v29 = vadd.f32 1.0, %v563_v25 }
 0x335   :  { %1240 = vmatmul.mubr.msk.f32.vlgmr.msra.gmra.mrb[4].mxu0 %vm289_vm4, %v963_v51  ;;  %1411 = vlog2.f32 %v569_v9  ;;  %v587_v17 = vadd.f32 1.0, %v2197_v14  ;;  %v2201_v20 = vpop.eup %1403  ;;  %v573_v30 = vadd.f32 1.0, %v572_v26  ;;  %v581_v38 = vmul.f32 -0.5, %v2195_v12 }
 0x336   :  { %1413 = vpow2.f32 %v542_v8  ;;  %v2203_v22 = vpop.eup %1405  ;;  %v596_v23 = vadd.f32 1.0, %v2201_v20  ;;  %v565_v1 = vmul.f32 %v1396_v4, %v564_v29  ;;  %vm567_vm4 = vcmp.lt.f32.partialorder %v566_v32, 0.0004427343 }
 0x337   :  { %1415 = vpow2.f32 %v544_v13  ;;  %v605_v27 = vadd.f32 1.0, %v2203_v22  ;;  %v2207_v28 = vpop.eup %1407  ;;  %v574_v37 = vmul.f32 %v1398_v6, %v573_v30  ;;  %vm2213_vm6 = vcmp.lt.f32.partialorder %v575_v33, 0.0004427343  ;;  %v499_v6 = vld [vmem:[#allocation30 + $0x18] sm:$0xff]  ;;  %v500_v30 = vld [vmem:[#allocation30 + $0x20] sm:$0xff] }
 0x338   :  { %1417 = vlog2.f32 %v578_v15  ;;  %v614_v34 = vadd.f32 1.0, %v2207_v28  ;;  %v582_v46 = vadd.f32 1.0, %v581_v38  ;;  %v590_v47 = vmul.f32 -0.5, %v2197_v14  ;;  %v484_v38 = vld [vmem:[#allocation27 + $0x20] sm:$0xff] }
 0x339   :  { %1419 = vlog2.f32 %v587_v17  ;;  %v584_v52 = vand.u32 2147483647, %v2195_v12  ;;  %v593_v53 = vand.u32 2147483647, %v2197_v14  ;;  %v599_v9 = vmul.f32 -0.5, %v2201_v20 }
 0x33a   :  { %1421 = vpow2.f32 %v546_v16  ;;  %v583_v59 = vmul.f32 %v2195_v12, %v582_v46  ;;  %v591_v60 = vadd.f32 1.0, %v590_v47  ;;  %v602_v12 = vand.u32 2147483647, %v2201_v20  ;;  %v488_v47 = vld [vmem:[#allocation27 + $0x40] sm:$0xff] }
 0x33b   :  { %1423 = vpow2.f32 %v548_v21  ;;  %vm585_vm7 = vcmp.lt.f32.partialorder %v584_v52, 0.0004427343  ;;  %vm2228_vm8 = vcmp.lt.f32.partialorder %v593_v53, 0.0004427343  ;;  %v608_v13 = vmul.f32 -0.5, %v2203_v22 }
 0x33c   :  { %1425 = vlog2.f32 %v596_v23  ;;  %v592_v8 = vmul.f32 %v2197_v14, %v591_v60  ;;  %v611_v15 = vand.u32 2147483647, %v2203_v22  ;;  %vm2243_vm9 = vcmp.lt.f32.partialorder %v602_v12, 0.0004427343 }
 0x33d   :  { %1427 = vlog2.f32 %v605_v27  ;;  %v609_v32 = vadd.f32 1.0, %v608_v13  ;;  %v526_v13 = vld [vmem:[#allocation28 + $0x70] sm:$0xff] }
 0x33e   :  { %v1410_v31 = vpop.eup %1409  ;;  %1429 = vpow2.f32 %v550_v24  ;;  %v600_v24 = vadd.f32 1.0, %v599_v9  ;;  %vm2248_vm10 = vcmp.lt.f32.partialorder %v611_v15, 0.0004427343  ;;  %v503_v15 = vld [vmem:[#allocation30 + $0x38] sm:$0xff]  ;;  %v556_v27 = vmul.f32 1.442695, %v526_v13 }
 0x33f   :  { %v1412_v35 = vpop.eup %1411  ;;  %v562_v36 = vmul.f32 0.6931472, %v1410_v31  ;;  %1431 = vlog2.f32 %v614_v34  ;;  %v617_v34 = vmul.f32 -0.5, %v2207_v28  ;;  %v610_v41 = vmul.f32 %v2203_v22, %v609_v32  ;;  %v524_v22 = vld [vmem:[#allocation28 + $0x60] sm:$0xff] }
 0x340   :  { %v2211_v39 = vpop.eup %1413  ;;  %v571_v40 = vmul.f32 0.6931472, %v1412_v35  ;;  %v601_v31 = vmul.f32 %v2201_v20, %v600_v24 }
 0x341   :  { %v2217_v42 = vpop.eup %1415  ;;  %v568_v45 = vsel %vm567_vm4, %v565_v1, %v562_v36  ;;  %v623_v48 = vadd.f32 1.0, %v2211_v39  ;;  %v620_v1 = vand.u32 2147483647, %v2207_v28 }
 0x342   :  { %v1418_v49 = vpop.eup %1417  ;;  %v577_v50 = vsel %vm2213_vm6, %v574_v37, %v571_v40  ;;  %v704_v51 = vmul.f32 %v568_v45, %v496_v43  ;;  %v626_v37 = vmul.f32 -0.5, %v2211_v39  ;;  %v501_v40 = vld [vmem:[#allocation30 + $0x28] sm:$0xff] }
 0x343   :  { %v1420_v54 = vpop.eup %1419  ;;  %v705_v57 = vmul.f32 %v577_v50, %v497_v44  ;;  %v580_v58 = vmul.f32 0.6931472, %v1418_v49  ;;  %1433 = vlog2.f32 %v623_v48  ;;  %v618_v44 = vadd.f32 1.0, %v617_v34  ;;  %v485_v49 = vld [vmem:[#allocation27 + $0x28] sm:$0xff] }
 0x344   :  { %v2226_v61 = vpop.eup %1421  ;;  %v720_v62 = vadd.f32 %v704_v51, %v480_v55  ;;  %v589_v63 = vmul.f32 0.6931472, %v1420_v54  ;;  %vm2259_vm11 = vcmp.lt.f32.partialorder %v620_v1, 0.0004427343  ;;  %v632_v51 = vadd.f32 1.0, %v2217_v42  ;;  %v502_v54 = vld [vmem:[#allocation30 + $0x30] sm:$0xff] }
 0x345   :  { %v2232_v3 = vpop.eup %1423  ;;  %v721_v4 = vadd.f32 %v705_v57, %v481_v56  ;;  %v586_v7 = vsel %vm585_vm7, %v583_v59, %v580_v58  ;;  %v619_v50 = vmul.f32 %v2207_v28, %v618_v44  ;;  %v627_v56 = vadd.f32 1.0, %v626_v37  ;;  %v504_v1 = vld [vmem:[#allocation30 + $0x40] sm:$0xff] }
 0x346   :  { %v1426_v10 = vpop.eup %1425  ;;  %v706_v11 = vmul.f32 %v586_v7, %v498_v5  ;;  %v595_v21 = vsel %vm2228_vm8, %v592_v8, %v589_v63  ;;  %1435 = vlog2.f32 %v632_v51  ;;  %v629_v58 = vand.u32 2147483647, %v2211_v39  ;;  %v486_v5 = vld [vmem:[#allocation27 + $0x30] sm:$0xff]  ;;  %v525_v7 = vld [vmem:[#allocation28 + $0x68] sm:$0xff]  ;;  %v492_v44 = vld [vmem:[#allocation27 + $0x60] sm:$0xff] }
 0x347   :  { %v1428_v16 = vpop.eup %1427  ;;  %v1293_v17 = vpack.c.bf16 %v721_v4, %v720_v62  ;;  %v598_v23 = vmul.f32 0.6931472, %v1426_v10  ;;  %v707_v25 = vmul.f32 %v595_v21, %v499_v6  ;;  %v635_v59 = vmul.f32 -0.5, %v2217_v42  ;;  %v506_v51 = vld [vmem:[#allocation30 + $0x50] sm:$0xff] }
 0x348   :  { %v2241_v14 = vpop.eup %1429  ;;  %v722_v26 = vadd.f32 %v706_v11, %v482_v18  ;;  %v607_v29 = vmul.f32 0.6931472, %v1428_v16  ;;  %v641_v28 = vadd.f32 1.0, %v2226_v61  ;;  %v650_v60 = vadd.f32 1.0, %v2232_v3 }
 0x349   :  { %1294 = vmatpush3.bf16.msra.mxu1 %v1293_v17  ;;  %v1432_v35 = vpop.eup %1431  ;;  %v723_v36 = vadd.f32 %v707_v25, %v483_v19  ;;  %v604_v20 = vsel %vm2243_vm9, %v601_v31, %v598_v23  ;;  %v552_v62 = vmul.f32 1.442695, %v524_v22  ;;  %v644_v4 = vmul.f32 -0.5, %v2226_v61  ;;  %v527_v17 = vld [vmem:[#allocation28 + $0x78] sm:$0xff]  ;;  %v489_v22 = vld [vmem:[#allocation27 + $0x48] sm:$0xff] }
 0x34a   :  { %1295 = vmatprep.subr.bf16.mxu1 %v1806_v0  ;;  %v616_v43 = vmul.f32 0.6931472, %v1432_v35  ;;  %v708_v46 = vmul.f32 %v604_v20, %v500_v30  ;;  %v613_v48 = vsel %vm2248_vm10, %v610_v41, %v607_v29  ;;  %1437 = vlog2.f32 %v641_v28  ;;  %v487_v23 = vld [vmem:[#allocation27 + $0x38] sm:$0xff] }
 0x34b   :  { %v1296_v45 = vpack.c.bf16 %v723_v36, %v722_v26  ;;  %v709_v52 = vmul.f32 %v613_v48, %v501_v40  ;;  %v628_v6 = vmul.f32 %v2211_v39, %v627_v56  ;;  %1439 = vlog2.f32 %v650_v60  ;;  %v490_v60 = vld [vmem:[#allocation27 + $0x50] sm:$0xff] }
 0x34c   :  { %v724_v53 = vadd.f32 %v708_v46, %v484_v38  ;;  %v622_v55 = vsel %vm2259_vm11, %v619_v50, %v616_v43  ;;  %vm2276_vm12 = vcmp.lt.f32.partialorder %v629_v58, 0.0004427343  ;;  %v636_v10 = vadd.f32 1.0, %v635_v59 }
 0x34d   :  { %1297 = vmatpush3.bf16.msra.mxu1 %v1296_v45  ;;  %v725_v57 = vadd.f32 %v709_v52, %v485_v49  ;;  %v710_v2 = vmul.f32 %v622_v55, %v502_v54  ;;  %v1434_v8 = vpop.eup %1433  ;;  %v653_v11 = vmul.f32 -0.5, %v2232_v3  ;;  %v659_v12 = vadd.f32 1.0, %v2241_v14  ;;  %v505_v49 = vld [vmem:[#allocation30 + $0x48] sm:$0xff]  ;;  %v494_v55 = vld [vmem:[#allocation27 + $0x70] sm:$0xff] }
 0x34e   :  { %1298 = vmatprep.subr.bf16.mxu1 %v1806_v0  ;;  %v625_v16 = vmul.f32 0.6931472, %v1434_v8  ;;  %v638_v39 = vand.u32 2147483647, %v2217_v42  ;;  %1441 = vpow2.f32 %v552_v62  ;;  %v645_v19 = vadd.f32 1.0, %v644_v4  ;;  %v507_v62 = vld [vmem:[#allocation30 + $0x58] sm:$0xff] }
 0x34f   :  { %v1299_v63 = vpack.c.bf16 %v725_v57, %v724_v53  ;;  %v726_v18 = vadd.f32 %v710_v2, %v486_v5  ;;  %v647_v21 = vand.u32 2147483647, %v2226_v61  ;;  %1443 = vlog2.f32 %v659_v12 }
 0x350   :  { %v631_v24 = vsel %vm2276_vm12, %v628_v6, %v625_v16  ;;  %v662_v25 = vmul.f32 -0.5, %v2241_v14  ;;  %v554_v26 = vmul.f32 1.442695, %v525_v7  ;;  %v637_v30 = vmul.f32 %v2217_v42, %v636_v10  ;;  %v1436_v33 = vpop.eup %1435  ;;  %v491_v6 = vld [vmem:[#allocation27 + $0x58] sm:$0xff] }
 0x351   :  { %1300 = vmatpush3.bf16.msra.mxu1 %v1299_v63  ;;  %v711_v29 = vmul.f32 %v631_v24, %v503_v15  ;;  %v654_v31 = vadd.f32 1.0, %v653_v11  ;;  %v558_v32 = vmul.f32 1.442695, %v527_v17  ;;  %vm2289_vm13 = vcmp.lt.f32.partialorder %v638_v39, 0.0004427343 }
 0x352   :  { %1301 = vmatprep.subr.bf16.mxu1 %v1806_v0  ;;  %v656_v35 = vand.u32 2147483647, %v2232_v3  ;;  %1445 = vpow2.f32 %v554_v26  ;;  %v634_v37 = vmul.f32 0.6931472, %v1436_v33  ;;  %v646_v38 = vmul.f32 %v2226_v61, %v645_v19  ;;  %v508_v33 = vld [vmem:[#allocation30 + $0x60] sm:$0xff] }
 0x353   :  { %v727_v36 = vadd.f32 %v711_v29, %v487_v23  ;;  %1447 = vpow2.f32 %v556_v27  ;;  %v663_v40 = vadd.f32 1.0, %v662_v25  ;;  %v665_v20 = vand.u32 2147483647, %v2241_v14  ;;  %v754_v25 = vld [vmem:[%s2378_s23] sm:$0x1] }
 0x354   :  { %1449 = vpow2.f32 %v558_v32  ;;  %v1438_v42 = vpop.eup %1437  ;;  %v640_v43 = vsel %vm2289_vm13, %v637_v30, %v634_v37  ;;  %vm2298_vm14 = vcmp.lt.f32.partialorder %v647_v21, 0.0004427343  ;;  %v655_v45 = vmul.f32 %v2232_v3, %v654_v31 }
 0x355   :  { %v1302_v41 = vpack.c.bf16 %v727_v36, %v726_v18  ;;  %v1440_v46 = vpop.eup %1439  ;;  %v643_v48 = vmul.f32 0.6931472, %v1438_v42  ;;  %v712_v61 = vmul.f32 %v640_v43, %v504_v1  ;;  %vm2303_vm15 = vcmp.lt.f32.partialorder %v656_v35, 0.0004427343 }
 0x356   :  { %v652_v52 = vmul.f32 0.6931472, %v1440_v46  ;;  %v664_v3 = vmul.f32 %v2241_v14, %v663_v40  ;;  %vm2311_vm0 = vcmp.lt.f32.partialorder %v665_v20, 0.0004427343  ;;  %v755_v26 = vmul.f32 1.442695, %v754_v25 }
 0x357   :  { %1303 = vmatpush3.bf16.msra.mxu1 %v1302_v41  ;;  %v649_v54 = vsel %vm2298_vm14, %v646_v38, %v643_v48  ;;  %v728_v58 = vadd.f32 %v712_v61, %v488_v47  ;;  %v510_v61 = vld [vmem:[#allocation30 + $0x70] sm:$0xff] }
 0x358   :  { %v1442_v53 = vpop.eup %1441  ;;  %1304 = vmatprep.subr.bf16.mxu1 %v1806_v0  ;;  %v713_v57 = vmul.f32 %v649_v54, %v505_v49  ;;  %v658_v59 = vsel %vm2303_vm15, %v655_v45, %v652_v52  ;;  %v509_v45 = vld [vmem:[#allocation30 + $0x68] sm:$0xff] }
 0x359   :  { %v1444_v56 = vpop.eup %1443  ;;  %v668_v28 = vadd.f32 1.0, %v1442_v53  ;;  %v714_v2 = vmul.f32 %v658_v59, %v506_v51  ;;  %v671_v7 = vmul.f32 -0.5, %v1442_v53  ;;  %v674_v21 = vand.u32 2147483647, %v1442_v53  ;;  %v493_v51 = vld [vmem:[#allocation27 + $0x68] sm:$0xff] }
 0x35a   :  { %v661_v63 = vmul.f32 0.6931472, %v1444_v56  ;;  %v729_v4 = vadd.f32 %v713_v57, %v489_v22  ;;  %v495_v57 = vld [vmem:[#allocation27 + $0x78] sm:$0xff] }
 0x35b   :  { %1451 = vlog2.f32 %v668_v28  ;;  %v730_v11 = vadd.f32 %v714_v2, %v490_v60  ;;  %v672_v17 = vadd.f32 1.0, %v671_v7  ;;  %vm675_vm1 = vcmp.lt.f32.partialorder %v674_v21, 0.0004427343 }
 0x35c   :  { %v1446_v5 = vpop.eup %1445  ;;  %v667_v14 = vsel %vm2311_vm0, %v664_v3, %v661_v63  ;;  %v1305_v9 = vpack.c.bf16 %v729_v4, %v728_v58 }
 0x35d   :  { %v1448_v8 = vpop.eup %1447  ;;  %v715_v10 = vmul.f32 %v667_v14, %v507_v62  ;;  %v677_v12 = vadd.f32 1.0, %v1446_v5  ;;  %v680_v18 = vmul.f32 -0.5, %v1446_v5  ;;  %v673_v27 = vmul.f32 %v1442_v53, %v672_v17  ;;  %v511_v53 = vld [vmem:[#allocation30 + $0x78] sm:$0xff] }
 0x35e   :  { %v1450_v13 = vpop.eup %1449  ;;  %v686_v15 = vadd.f32 1.0, %v1448_v8  ;;  %1306 = vmatpush3.bf16.msra.mxu1 %v1305_v9  ;;  %v689_v23 = vmul.f32 -0.5, %v1448_v8  ;;  %v683_v31 = vand.u32 2147483647, %v1446_v5  ;;  %v692_v35 = vand.u32 2147483647, %v1448_v8 }
 0x35f   :  { %v731_v16 = vadd.f32 %v715_v10, %v491_v6  ;;  %1453 = vlog2.f32 %v677_v12  ;;  %v695_v39 = vadd.f32 1.0, %v1450_v13  ;;  %1307 = vmatprep.subr.bf16.mxu1 %v1806_v0  ;;  %v698_v24 = vmul.f32 -0.5, %v1450_v13 }
 0x360   :  { %1455 = vlog2.f32 %v686_v15  ;;  %v681_v29 = vadd.f32 1.0, %v680_v18  ;;  %v690_v32 = vadd.f32 1.0, %v689_v23  ;;  %v701_v1 = vand.u32 2147483647, %v1450_v13 }
 0x361   :  { %v1308_v19 = vpack.c.bf16 %v731_v16, %v730_v11  ;;  %1457 = vlog2.f32 %v695_v39  ;;  %v699_v36 = vadd.f32 1.0, %v698_v24  ;;  %vm2324_vm2 = vcmp.lt.f32.partialorder %v683_v31, 0.0004427343  ;;  %v753_v11 = vld [vmem:[%s2439_s21] sm:$0x1] }
 0x362   :  { %1459 = vpow2.f32 %v755_v26  ;;  %v682_v38 = vmul.f32 %v1446_v5, %v681_v29  ;;  %v691_v41 = vmul.f32 %v1448_v8, %v690_v32  ;;  %vm2328_vm3 = vcmp.lt.f32.partialorder %v692_v35, 0.0004427343 }
 0x363   :  { %1309 = vmatpush3.bf16.msra.mxu1 %v1308_v19  ;;  %v700_v49 = vmul.f32 %v1450_v13, %v699_v36  ;;  %vm702_vm5 = vcmp.lt.f32.partialorder %v701_v1, 0.0004427343  ;;  %v752_v13 = vld [vmem:[%s2440_s7] sm:$0x1] }
 0x364   :  { %1310 = vmatprep.subr.bf16.mxu1 %v1806_v0 }
 0x365   :  { %v1452_v30 = vpop.eup %1451 }
 0x366   :  { %v670_v34 = vmul.f32 0.6931472, %v1452_v30 }
 0x368   :  { %v676_v37 = vsel %vm675_vm1, %v673_v27, %v670_v34 }
 0x369   :  { %v1454_v40 = vpop.eup %1453  ;;  %v716_v42 = vmul.f32 %v676_v37, %v508_v33 }
 0x36a   :  { %v1456_v43 = vpop.eup %1455  ;;  %v679_v46 = vmul.f32 0.6931472, %v1454_v40 }
 0x36b   :  { %v1458_v48 = vpop.eup %1457  ;;  %v688_v50 = vmul.f32 0.6931472, %v1456_v43  ;;  %v732_v3 = vadd.f32 %v716_v42, %v492_v44 }
 0x36c   :  { %v685_v52 = vsel %vm2324_vm2, %v682_v38, %v679_v46  ;;  %v697_v22 = vmul.f32 0.6931472, %v1458_v48  ;;  %v1460_v28 = vpop.eup %1459 }
 0x36d   :  { %v717_v54 = vmul.f32 %v685_v52, %v509_v45  ;;  %v694_v56 = vsel %vm2328_vm3, %v691_v41, %v688_v50  ;;  %v757_v2 = vadd.f32 1.0, %v1460_v28  ;;  %v760_v14 = vmul.f32 -0.5, %v1460_v28 }
 0x36e   :  { %v703_v58 = vsel %vm702_vm5, %v700_v49, %v697_v22  ;;  %v718_v59 = vmul.f32 %v694_v56, %v510_v61  ;;  %v763_v8 = vand.u32 2147483647, %v1460_v28 }
 0x36f   :  { %v733_v60 = vadd.f32 %v717_v54, %v493_v51  ;;  %v719_v62 = vmul.f32 %v703_v58, %v511_v53  ;;  %1461 = vlog2.f32 %v757_v2  ;;  %v761_v7 = vadd.f32 1.0, %v760_v14 }
 0x370   :  { %v734_v63 = vadd.f32 %v718_v59, %v494_v55  ;;  %vm764_vm4 = vcmp.lt.f32.partialorder %v763_v8, 0.0004427343 }
 0x371   :  { %v1311_v4 = vpack.c.bf16 %v733_v60, %v732_v3  ;;  %v735_v5 = vadd.f32 %v719_v62, %v495_v57  ;;  %v762_v9 = vmul.f32 %v1460_v28, %v761_v7 }
 0x373   :  { %1312 = vmatpush3.bf16.msra.mxu1 %v1311_v4  ;;  %v1314_v6 = vpack.c.bf16 %v735_v5, %v734_v63 }
 0x374   :  { %1313 = vmatprep.subr.bf16.mxu1 %v1806_v0  ;;  %v1180_v0 = vld [vmem:[#allocation7] ss:$0 sm:$0xff] }
 0x377   :  { %1315 = vmatpush3.bf16.msra.mxu1 %v1314_v6 }
 0x379   :  { %v1462_v10 = vpop.eup %1461 }
 0x37a   :  { %v759_v12 = vmul.f32 0.6931472, %v1462_v10 }
 0x37c   :  { %v765_v15 = vsel %vm764_vm4, %v762_v9, %v759_v12 }
 0x37d   :  { %v766_v16 = vmul.f32 %v765_v15, %v753_v11 }
 0x37f   :  { %v767_v39 = vadd.f32 %v766_v16, %v752_v13 }
 0x381   :  { %768 = vst [vmem:[#allocation9] sm:$0x1] %v767_v39 }
 0x388   :  { %v1182_v34 = vld [vmem:[#allocation9] ss:$0 sm:$0xff] }
 0x408   :  { %v1044_v17 = vpop.f32.mrb[4].mxu0 }
 0x409   :  { %v1045_v18 = vadd.f32 %v1180_v0, %v1044_v17  ;;  %v1241_v19 = vpop.f32.mrb[5].mxu0 }
 0x40b   :  { %v1049_v21 = vmul.f32 1.442695, %v1045_v18  ;;  %vm1048_vm7 = vcmp.gt.f32.partialorder %v1045_v18, 20.0 }
 0x40d   :  { %1463 = vpow2.f32 %v1049_v21 }
 0x417   :  { %v1464_v23 = vpop.eup %1463 }
 0x418   :  { %v1051_v24 = vadd.f32 1.0, %v1464_v23  ;;  %v1054_v25 = vmul.f32 -0.5, %v1464_v23  ;;  %v1057_v27 = vand.u32 2147483647, %v1464_v23 }
 0x41a   :  { %1465 = vlog2.f32 %v1051_v24  ;;  %v1055_v26 = vadd.f32 1.0, %v1054_v25  ;;  %vm1058_vm6 = vcmp.lt.f32.partialorder %v1057_v27, 0.0004427343 }
 0x41c   :  { %v1056_v31 = vmul.f32 %v1464_v23, %v1055_v26 }
 0x424   :  { %v1466_v29 = vpop.eup %1465 }
 0x425   :  { %v1053_v30 = vmul.f32 0.6931472, %v1466_v29 }
 0x427   :  { %v1059_v32 = vsel %vm1058_vm6, %v1056_v31, %v1053_v30 }
 0x428   :  { %v1060_v33 = vsel %vm1048_vm7, %v1045_v18, %v1059_v32 }
 0x429   :  { %1275 = vmatmul.mubr.f32.vlgmr.msra.gmra.mrb[0].mxu1 %v1060_v33 }
 0x4fc   :  { %v1150_v35 = vpop.f32.mrb[0].mxu1 }
 0x4fd   :  { %v1151_v36 = vadd.f32 %v1182_v34, %v1150_v35  ;;  %v1276_v1 = vpop.f32.mrb[1].mxu1 }
 0x4ff   :  { %1154 = vst [vmem:[#allocation31] sm:$0xff] %v1151_v36 }
 0x500   :  { %1764 = shalt.err (!%p1761_p10)
}
 0x501   :  { %s2441_s29 = sld [smem:[#allocation52_spill]] }
 0x507   :  { %s1765_s4 = scalar_lea.hbm %s2441_s29, 128 }
 0x508   :  { %p1766_p11 = scmp.ne.s32.totalorder %s2441_s29, %s1765_s4  ;;  %p1769_p12 = scmp.lt.u32.totalorder %s1765_s4, %s2441_s29 }
 0x50a   :  { %p1771_p13 = pnand %p1769_p12, %p1766_p11 }
 0x50c   :  { %1774 = shalt.err (!%p1771_p13)
}
 0x50d   :  { %1164 = dma.vmem_to_hbm [thread:$0]  %s1162_s25, 128, %s2441_s29, [#allocation12]  }
 0x50e   :  { %1789 = dma.done.wait [#allocation12], 128  }
 0x50f   :  { %1790 = vsyncadd [#allocation12], 4294967168 }
 0x510   :  { %1168 = vsyncpa [#allocation11], 1 }
 0x511   :  { %1169 = vsyncpa [#allocation14], 1 }
 0x512   :  { %1170 = vsyncpa [#allocation17], 1 }
 0x513   :  { %1171 = vsyncpa [#allocation20], 1 }
 0x514   :  { %1172 = vsyncpa [#allocation23], 1 }
 0x515   :  { %1173 = vsyncpa [#allocation26], 1 }
 0x516   :  { %1174 = vsyncpa [#allocation29], 1 }
 0x517   :  { %1175 = vsyncpa [#allocation12], 1 }

</bundles_post_ra>
